<compile_context>
chip_gen: v7x
topology: tpu7x:2x2x1
jax: 0.10.0
libtpu: 0.0.40
codegen_flags: <defaults>
</compile_context>

<pallas_src>
import jax
import jax.numpy as jnp
from jax import lax
from jax.experimental import pallas as pl
from jax.experimental.pallas import tpu as pltpu


THRESHOLD = 1.0

# Conservative per-kernel VMEM budget for default chunk sizing: fits inside
# v7x's 32 MiB scoped default (64 MiB physical), far below v5e/v6e's 128 MiB.
_VMEM_BUDGET_BYTES = 20 * 1024 * 1024


def _vmem_estimate_bytes(t_chunk, b_tile, num_input, num_hidden, num_output,
                         mm_bytes, spk_bytes):
    """Rough VMEM footprint of one kernel instance (pipelined buffers + scratch)."""
    rows = t_chunk * b_tile
    x_blk = rows * num_input * mm_bytes                      # input spike slab
    mem_blk = rows * num_output * 4                          # f32 mem trace slab
    spk_blk = rows * num_output * spk_bytes                  # narrow spike slab
    weights = ((num_input * num_hidden + num_hidden * num_output) * mm_bytes
               + (num_hidden + num_output) * 4)              # biases f32
    scratch = ((b_tile * (num_hidden + num_output)) * 4      # membranes
               + rows * num_hidden * mm_bytes                # hidden spikes
               + rows * num_hidden * 4                       # hidden currents
               + rows * num_output * 4)                      # output currents
    # Pipelined operands are double-buffered by the Pallas pipeline (resident
    # weights are fetched once but still occupy two buffers).
    return 2 * (x_blk + mem_blk + spk_blk + weights) + scratch


def _make_snn_kernel(*, beta: float, threshold: float, t_chunk: int, b_tile: int):
    """Per-time-chunk LIF kernel.  Membrane state lives in VMEM scratch and
    persists across the sequential time-chunk grid axis (axis 1)."""
    beta = float(beta)
    threshold = float(threshold)

    def kernel(x_ref, wht_ref, bh_ref, wot_ref, bo_ref,     # inputs
               mem_out_ref, spk_out_ref,                    # outputs
               hmem_ref, omem_ref, hspk_ref, hcur_ref, ocur_ref):  # scratch
        ti = pl.program_id(1)   # time-chunk index (sequential / "arbitrary")

        # init_leaky(): membranes start at zero at the first time chunk of
        # every batch tile.
        @pl.when(ti == 0)
        def _():
            hmem_ref[...] = jnp.zeros_like(hmem_ref)
            omem_ref[...] = jnp.zeros_like(omem_ref)

        rows = t_chunk * b_tile
        num_input = x_ref.shape[-1]

        # ---- phase 1: hidden currents for the whole chunk, one MXU call ----
        # Input already arrives in the matmul dtype; no in-kernel cast.
        x_flat = x_ref[...].reshape(rows, num_input)
        hcur_ref[...] = (
            jnp.dot(x_flat, wht_ref[...], preferred_element_type=jnp.float32)
            + bh_ref[...])

        # ---- phase 2: sequential hidden LIF (snn.Leaky, subtract reset) ----
        # Reset indicator == spike of the previous step (carried in f32 {0,1});
        # only re-derived from the membrane at the chunk boundary.
        def hidden_step(t, carry):
            hmem, prev_spk = carry
            off = pl.multiple_of(t * b_tile, b_tile)
            cur = hcur_ref[pl.ds(off, b_tile), :]
            hmem = beta * hmem + cur - prev_spk * threshold
            spk = (hmem > threshold).astype(jnp.float32)
            hspk_ref[pl.ds(off, b_tile), :] = spk.astype(hspk_ref.dtype)
            return hmem, spk

        hmem0 = hmem_ref[...]
        hspk0 = (hmem0 > threshold).astype(jnp.float32)
        hmem, _ = lax.fori_loop(0, t_chunk, hidden_step, (hmem0, hspk0),
                                unroll=True)
        hmem_ref[...] = hmem

        # ---- phase 3: output currents for the whole chunk, one MXU call ----
        ocur_ref[...] = (
            jnp.dot(hspk_ref[...], wot_ref[...],
                    preferred_element_type=jnp.float32)
            + bo_ref[...])

        # ---- phase 4: sequential output LIF; write mem + spike traces ----
        def output_step(t, carry):
            omem, prev_spk = carry
            off = pl.multiple_of(t * b_tile, b_tile)
            cur = ocur_ref[pl.ds(off, b_tile), :]
            omem = beta * omem + cur - prev_spk * threshold
            spk = (omem > threshold).astype(jnp.float32)
            mem_out_ref[t] = omem
            spk_out_ref[t] = spk.astype(spk_out_ref.dtype)
            return omem, spk

        omem0 = omem_ref[...]
        ospk0 = (omem0 > threshold).astype(jnp.float32)
        omem, _ = lax.fori_loop(0, t_chunk, output_step, (omem0, ospk0),
                                unroll=True)
        omem_ref[...] = omem

    return kernel


def snn_forward_pallas(spiked_data, w_h, b_h, w_o, b_o, *, beta,
                       t_chunk=None, batch_tile=None,
                       matmul_dtype=jnp.bfloat16,
                       spike_dtype=jnp.bfloat16):
    """spiked_data: (num_steps, B, num_input) of {0,1}.
    Returns (output_spikes_trace [spike_dtype], output_mem_trace [float32]),
    each of shape (num_steps, B, num_output)."""
    num_steps, B, num_input = spiked_data.shape
    num_hidden = w_h.shape[0]
    num_output = w_o.shape[0]
    mm_bytes = jnp.dtype(matmul_dtype).itemsize
    spk_bytes = jnp.dtype(spike_dtype).itemsize

    # Batch must give sublane-aligned tiles; pad with zero rows if necessary.
    Bp = ((B + 7) // 8) * 8
    x = spiked_data.astype(matmul_dtype)
    if Bp != B:
        x = jnp.pad(x, ((0, 0), (0, Bp - B), (0, 0)))

    if batch_tile is None:
        # Prefer >=2 batch tiles so both v7x TensorCores get work (no effect
        # on single-TC v5e/v6e).
        batch_tile = Bp // 2 if (Bp % 16 == 0) else Bp
    assert batch_tile % 8 == 0, "batch_tile must be a multiple of 8"
    assert Bp % batch_tile == 0, "batch_tile must divide (padded) batch"

    if t_chunk is None:
        # Largest divisor of num_steps that keeps the VMEM footprint inside
        # the cross-generation budget (re-derived for v7x's smaller VMEM).
        t_chunk = 1
        for cand in range(1, num_steps + 1):
            if num_steps % cand == 0 and _vmem_estimate_bytes(
                    cand, batch_tile, num_input, num_hidden, num_output,
                    mm_bytes, spk_bytes) <= _VMEM_BUDGET_BYTES:
                t_chunk = cand
    assert num_steps % t_chunk == 0, "t_chunk must divide num_steps"

    # Pre-transpose weights once (x @ W.T == x @ W_T); cast to MXU dtype.
    wht = w_h.T.astype(matmul_dtype)                     # (num_input, num_hidden)
    wot = w_o.T.astype(matmul_dtype)                     # (num_hidden, num_output)
    bh2 = b_h.reshape(1, num_hidden).astype(jnp.float32)
    bo2 = b_o.reshape(1, num_output).astype(jnp.float32)

    kernel = _make_snn_kernel(beta=float(beta), threshold=THRESHOLD,
                              t_chunk=t_chunk, b_tile=batch_tile)

    grid = (Bp // batch_tile, num_steps // t_chunk)
    rows = t_chunk * batch_tile

    grid_spec = pltpu.PrefetchScalarGridSpec(
        num_scalar_prefetch=0,
        grid=grid,
        in_specs=[
            # time-chunk x batch-tile slab of input spikes (matmul dtype)
            pl.BlockSpec((t_chunk, batch_tile, num_input),
                         lambda bi, ti: (ti, bi, 0)),
            # resident (constant index_map) weights / biases
            pl.BlockSpec((num_input, num_hidden), lambda bi, ti: (0, 0)),
            pl.BlockSpec((1, num_hidden), lambda bi, ti: (0, 0)),
            pl.BlockSpec((num_hidden, num_output), lambda bi, ti: (0, 0)),
            pl.BlockSpec((1, num_output), lambda bi, ti: (0, 0)),
        ],
        out_specs=[
            pl.BlockSpec((t_chunk, batch_tile, num_output),
                         lambda bi, ti: (ti, bi, 0)),      # f32 membrane trace
            pl.BlockSpec((t_chunk, batch_tile, num_output),
                         lambda bi, ti: (ti, bi, 0)),      # narrow spike trace
        ],
        scratch_shapes=[
            pltpu.VMEM((batch_tile, num_hidden), jnp.float32),   # hidden membrane
            pltpu.VMEM((batch_tile, num_output), jnp.float32),   # output membrane
            pltpu.VMEM((rows, num_hidden), matmul_dtype),        # hidden spikes
            pltpu.VMEM((rows, num_hidden), jnp.float32),         # hidden currents
            pltpu.VMEM((rows, num_output), jnp.float32),         # output currents
        ],
    )

    est = _vmem_estimate_bytes(t_chunk, batch_tile, num_input, num_hidden,
                               num_output, mm_bytes, spk_bytes)
    vmem_limit = int(min(max(2 * est, 32 * 1024 * 1024), 64 * 1024 * 1024))

    flops = (2 * num_steps * Bp * (num_input * num_hidden
                                   + num_hidden * num_output)
             + 10 * num_steps * Bp * (num_hidden + num_output))
    bytes_accessed = (num_steps * Bp * num_input * mm_bytes
                      + num_steps * Bp * num_output * (4 + spk_bytes)
                      + (num_input * num_hidden
                         + num_hidden * num_output) * mm_bytes)
    cost = pl.CostEstimate(flops=int(flops), transcendentals=0,
                           bytes_accessed=int(bytes_accessed))

    mem_trace, spk_trace = pl.pallas_call(
        kernel,
        out_shape=(
            jax.ShapeDtypeStruct((num_steps, Bp, num_output), jnp.float32),
            jax.ShapeDtypeStruct((num_steps, Bp, num_output), spike_dtype),
        ),
        grid_spec=grid_spec,
        compiler_params=pltpu.CompilerParams(
            # batch tiles are independent (usable by both v7x TensorCores);
            # the time axis carries recurrent state -> sequential.
            dimension_semantics=("parallel", "arbitrary"),
            vmem_limit_bytes=vmem_limit,
        ),
        cost_estimate=cost,
    )(x, wht, bh2, wot, bo2)

    if Bp != B:
        mem_trace = mem_trace[:, :B]
        spk_trace = spk_trace[:, :B]
    # Spikes are exactly {0, 1}; kept in spike_dtype (bf16) to avoid an extra
    # full-trace HBM pass in the wrapper.
    return spk_trace, mem_trace


def snn_forward_reference(spiked_data, w_h, b_h, w_o, b_o, *, beta,
                          matmul_dtype=jnp.bfloat16):
    """Pure-JAX reference matching snntorch Leaky(beta, reset='subtract'),
    using the same matmul dtype as the kernel."""
    num_steps, B, _ = spiked_data.shape
    num_hidden = w_h.shape[0]
    num_output = w_o.shape[0]
    wht = w_h.T.astype(matmul_dtype)
    wot = w_o.T.astype(matmul_dtype)
    hmem = jnp.zeros((B, num_hidden), jnp.float32)
    omem = jnp.zeros((B, num_output), jnp.float32)
    x = spiked_data.astype(matmul_dtype)
    spk_trace, mem_trace = [], []
    for t in range(num_steps):
        hcur = jnp.dot(x[t], wht, preferred_element_type=jnp.float32) + b_h
        hmem = beta * hmem + hcur - (hmem > THRESHOLD).astype(jnp.float32) * THRESHOLD
        hspk = (hmem > THRESHOLD).astype(matmul_dtype)
        ocur = jnp.dot(hspk, wot, preferred_element_type=jnp.float32) + b_o
        omem = beta * omem + ocur - (omem > THRESHOLD).astype(jnp.float32) * THRESHOLD
        spk_trace.append((omem > THRESHOLD).astype(jnp.float32))
        mem_trace.append(omem)
    return jnp.stack(spk_trace), jnp.stack(mem_trace)


if __name__ == "__main__":
    # Small, forward-consistent shapes; exercises both grid axes
    # (2 batch tiles x 2 time chunks) with bf16-tile-aligned row groups.
    beta = 0.9
    batch = 32
    num_input = 32
    num_hidden = 64
    num_output = 16
    num_steps = 16

    key = jax.random.PRNGKey(0)
    k_data, k_spk, k_wh, k_bh, k_wo, k_bo = jax.random.split(key, 6)

    # Input "data" in [0, 1] (rate-coding probabilities), shape (B, num_input).
    data = jax.random.uniform(k_data, (batch, num_input), dtype=jnp.float32)

    # spikegen.rate: Bernoulli(p=data) sampled independently per time step.
    # Generated here (glue), laid out time-major (num_steps, B, num_input).
    probs = jnp.broadcast_to(data[None, :, :], (num_steps, batch, num_input))
    spiked_data = jax.random.bernoulli(k_spk, probs).astype(jnp.float32)

    # nn.Linear-style deterministic init: U(-1/sqrt(fan_in), 1/sqrt(fan_in)).
    bound_h = 1.0 / float(num_input) ** 0.5
    bound_o = 1.0 / float(num_hidden) ** 0.5
    w_h = jax.random.uniform(k_wh, (num_hidden, num_input), jnp.float32,
                             -bound_h, bound_h)
    b_h = jax.random.uniform(k_bh, (num_hidden,), jnp.float32, -bound_h, bound_h)
    w_o = jax.random.uniform(k_wo, (num_output, num_hidden), jnp.float32,
                             -bound_o, bound_o)
    b_o = jax.random.uniform(k_bo, (num_output,), jnp.float32, -bound_o, bound_o)

    spk_trace, mem_trace = snn_forward_pallas(
        spiked_data, w_h, b_h, w_o, b_o, beta=beta, t_chunk=8, batch_tile=16)
    jax.block_until_ready((spk_trace, mem_trace))

    # Sanity-check against a pure-JAX reference of the same matmul dtype.
    # (Exact f32-weight parity with a PyTorch forward is not asserted here:
    #  near-threshold membranes can legitimately flip spikes under bf16
    #  weight rounding; pass matmul_dtype=jnp.float32 for an f32 path.)
    ref_spk, ref_mem = snn_forward_reference(
        spiked_data, w_h, b_h, w_o, b_o, beta=beta, matmul_dtype=jnp.bfloat16)
    assert spk_trace.shape == (num_steps, batch, num_output)
    assert mem_trace.shape == (num_steps, batch, num_output)
    assert jnp.allclose(mem_trace, ref_mem, atol=1e-4, rtol=1e-4), \
        float(jnp.max(jnp.abs(mem_trace - ref_mem)))
    # Spikes may only differ where the membrane sits within float tolerance of
    # the threshold (knife-edge), otherwise they must match exactly.
    knife_edge = jnp.abs(ref_mem - THRESHOLD) < 1e-3
    spk_f32 = spk_trace.astype(jnp.float32)
    assert bool(jnp.all((spk_f32 == ref_spk) | knife_edge))

    # TODO(synk): plotsrc.plot_snn_spikes / random sample selection is
    # visualization-only (testing=True path) and has no kernel equivalent.
    print("KERNEL_OK")
</pallas_src>

<mosaic_0001>
module attributes {stable_mosaic.version = 11 : i64} {
  func.func @kernel(%arg0: i32, %arg1: i32, %arg2: memref<8x16x32xbf16, #tpu.memory_space<vmem>>, %arg3: memref<32x64xbf16, #tpu.memory_space<vmem>>, %arg4: memref<1x64xf32, #tpu.memory_space<vmem>>, %arg5: memref<64x16xbf16, #tpu.memory_space<vmem>>, %arg6: memref<1x16xf32, #tpu.memory_space<vmem>>, %arg7: memref<8x16x16xf32, #tpu.memory_space<vmem>>, %arg8: memref<8x16x16xbf16, #tpu.memory_space<vmem>>, %arg9: memref<16x64xf32, #tpu.memory_space<vmem>>, %arg10: memref<16x16xf32, #tpu.memory_space<vmem>>, %arg11: memref<128x64xbf16, #tpu.memory_space<vmem>>, %arg12: memref<128x64xf32, #tpu.memory_space<vmem>>, %arg13: memref<128x16xf32, #tpu.memory_space<vmem>>) attributes {dimension_semantics = [#tpu.dimension_semantics<parallel>, #tpu.dimension_semantics<arbitrary>], iteration_bounds = array<i64: 2, 2>, scalar_prefetch = 0 : i64, scratch_operands = 5 : i64, tpu.core_type = #tpu.core_type<tc>, window_params = [{transform_indices = @transform_0, window_bounds = array<i64: 8, 16, 32>}, {pipeline_mode = #tpu.pipeline_mode<synchronous>, transform_indices = @transform_1, window_bounds = array<i64: 32, 64>}, {pipeline_mode = #tpu.pipeline_mode<synchronous>, transform_indices = @transform_2, window_bounds = array<i64: 1, 64>}, {pipeline_mode = #tpu.pipeline_mode<synchronous>, transform_indices = @transform_3, window_bounds = array<i64: 64, 16>}, {pipeline_mode = #tpu.pipeline_mode<synchronous>, transform_indices = @transform_4, window_bounds = array<i64: 1, 16>}, {transform_indices = @transform_5, window_bounds = array<i64: 8, 16, 16>}, {transform_indices = @transform_6, window_bounds = array<i64: 8, 16, 16>}]} {
    %c0_i32 = arith.constant 0 : i32
    %0 = arith.cmpi eq, %arg1, %c0_i32 : i32
    %1 = arith.extui %0 : i1 to i32
    %c0_i32_0 = arith.constant 0 : i32
    %2 = arith.cmpi ne, %1, %c0_i32_0 : i32
    scf.if %2 {
      %cst_157 = arith.constant 0.000000e+00 : f32
      %350 = vector.broadcast %cst_157 : f32 to vector<16x64xf32>
      %c0_158 = arith.constant 0 : index
      %c0_159 = arith.constant 0 : index
      %351 = vector.load %arg9[%c0_158, %c0_159] : memref<16x64xf32, #tpu.memory_space<vmem>>, vector<16x64xf32>
      tpu.vector_store %arg9[%c0_158, %c0_159], %350 {strides = array<i32>} : memref<16x64xf32, #tpu.memory_space<vmem>>, vector<16x64xf32>,
      %cst_160 = arith.constant 0.000000e+00 : f32
      %352 = vector.broadcast %cst_160 : f32 to vector<16x16xf32>
      %c0_161 = arith.constant 0 : index
      %c0_162 = arith.constant 0 : index
      %353 = vector.load %arg10[%c0_161, %c0_162] : memref<16x16xf32, #tpu.memory_space<vmem>>, vector<16x16xf32>
      tpu.vector_store %arg10[%c0_161, %c0_162], %352 {strides = array<i32>} : memref<16x16xf32, #tpu.memory_space<vmem>>, vector<16x16xf32>,
    } else {
    }
    %c0 = arith.constant 0 : index
    %c0_1 = arith.constant 0 : index
    %c0_2 = arith.constant 0 : index
    %3 = vector.load %arg2[%c0, %c0_1, %c0_2] : memref<8x16x32xbf16, #tpu.memory_space<vmem>>, vector<8x16x32xbf16>
    %4 = vector.shape_cast %3 : vector<8x16x32xbf16> to vector<128x32xbf16>
    %c0_3 = arith.constant 0 : index
    %c0_4 = arith.constant 0 : index
    %5 = vector.load %arg3[%c0_3, %c0_4] : memref<32x64xbf16, #tpu.memory_space<vmem>>, vector<32x64xbf16>
    %cst = arith.constant dense<0.000000e+00> : vector<128x64xf32>
    %6 = tpu.matmul %4, %5, %cst {dimension_numbers = #tpu.dot_dimension_numbers<[1], [0], [0], [1], [0, 0, 1, 1], [], []>} : vector<128x32xbf16>, vector<32x64xbf16>, vector<128x64xf32> -> vector<128x64xf32>
    %c0_5 = arith.constant 0 : index
    %c0_6 = arith.constant 0 : index
    %7 = vector.load %arg4[%c0_5, %c0_6] : memref<1x64xf32, #tpu.memory_space<vmem>>, vector<1x64xf32>
    %8 = vector.broadcast %7 : vector<1x64xf32> to vector<128x64xf32>
    %9 = arith.addf %6, %8 : vector<128x64xf32>
    %c0_7 = arith.constant 0 : index
    %c0_8 = arith.constant 0 : index
    %10 = vector.load %arg12[%c0_7, %c0_8] : memref<128x64xf32, #tpu.memory_space<vmem>>, vector<128x64xf32>
    tpu.vector_store %arg12[%c0_7, %c0_8], %9 {strides = array<i32>} : memref<128x64xf32, #tpu.memory_space<vmem>>, vector<128x64xf32>,
    %c0_9 = arith.constant 0 : index
    %c0_10 = arith.constant 0 : index
    %11 = vector.load %arg9[%c0_9, %c0_10] : memref<16x64xf32, #tpu.memory_space<vmem>>, vector<16x64xf32>
    %cst_11 = arith.constant 1.000000e+00 : f32
    %12 = vector.broadcast %cst_11 : f32 to vector<16x64xf32>
    %13 = arith.cmpf ogt, %11, %12 : vector<16x64xf32>
    %14 = arith.extui %13 : vector<16x64xi1> to vector<16x64xi32>
    %15 = arith.sitofp %14 : vector<16x64xi32> to vector<16x64xf32>
    %c0_i32_12 = arith.constant 0 : i32
    %c16_i32 = arith.constant 16 : i32
    %16 = arith.muli %c0_i32_12, %c16_i32 : i32
    %17 = tpu.assume_multiple %16, 16 : i32
    %18 = arith.index_cast %17 : i32 to index
    %c0_13 = arith.constant 0 : index
    %19 = vector.load %arg12[%18, %c0_13] : memref<128x64xf32, #tpu.memory_space<vmem>>, vector<16x64xf32>
    %cst_14 = arith.constant 0.899999976 : f32
    %20 = vector.broadcast %cst_14 : f32 to vector<16x64xf32>
    %21 = arith.mulf %20, %11 : vector<16x64xf32>
    %22 = arith.addf %21, %19 : vector<16x64xf32>
    %cst_15 = arith.constant 1.000000e+00 : f32
    %23 = vector.broadcast %cst_15 : f32 to vector<16x64xf32>
    %24 = arith.mulf %15, %23 : vector<16x64xf32>
    %25 = arith.subf %22, %24 : vector<16x64xf32>
    %cst_16 = arith.constant 1.000000e+00 : f32
    %26 = vector.broadcast %cst_16 : f32 to vector<16x64xf32>
    %27 = arith.cmpf ogt, %25, %26 : vector<16x64xf32>
    %28 = arith.extui %27 : vector<16x64xi1> to vector<16x64xi32>
    %29 = arith.sitofp %28 : vector<16x64xi32> to vector<16x64xf32>
    %30 = arith.truncf %29 : vector<16x64xf32> to vector<16x64xbf16>
    %31 = arith.index_cast %17 : i32 to index
    %c0_17 = arith.constant 0 : index
    %32 = vector.load %arg11[%31, %c0_17] : memref<128x64xbf16, #tpu.memory_space<vmem>>, vector<16x64xbf16>
    tpu.vector_store %arg11[%31, %c0_17], %30 {strides = array<i32>} : memref<128x64xbf16, #tpu.memory_space<vmem>>, vector<16x64xbf16>,
    %c1_i32 = arith.constant 1 : i32
    %c16_i32_18 = arith.constant 16 : i32
    %33 = arith.muli %c1_i32, %c16_i32_18 : i32
    %34 = tpu.assume_multiple %33, 16 : i32
    %35 = arith.index_cast %34 : i32 to index
    %c0_19 = arith.constant 0 : index
    %36 = vector.load %arg12[%35, %c0_19] : memref<128x64xf32, #tpu.memory_space<vmem>>, vector<16x64xf32>
    %cst_20 = arith.constant 0.899999976 : f32
    %37 = vector.broadcast %cst_20 : f32 to vector<16x64xf32>
    %38 = arith.mulf %37, %25 : vector<16x64xf32>
    %39 = arith.addf %38, %36 : vector<16x64xf32>
    %cst_21 = arith.constant 1.000000e+00 : f32
    %40 = vector.broadcast %cst_21 : f32 to vector<16x64xf32>
    %41 = arith.mulf %29, %40 : vector<16x64xf32>
    %42 = arith.subf %39, %41 : vector<16x64xf32>
    %cst_22 = arith.constant 1.000000e+00 : f32
    %43 = vector.broadcast %cst_22 : f32 to vector<16x64xf32>
    %44 = arith.cmpf ogt, %42, %43 : vector<16x64xf32>
    %45 = arith.extui %44 : vector<16x64xi1> to vector<16x64xi32>
    %46 = arith.sitofp %45 : vector<16x64xi32> to vector<16x64xf32>
    %47 = arith.truncf %46 : vector<16x64xf32> to vector<16x64xbf16>
    %48 = arith.index_cast %34 : i32 to index
    %c0_23 = arith.constant 0 : index
    %49 = vector.load %arg11[%48, %c0_23] : memref<128x64xbf16, #tpu.memory_space<vmem>>, vector<16x64xbf16>
    tpu.vector_store %arg11[%48, %c0_23], %47 {strides = array<i32>} : memref<128x64xbf16, #tpu.memory_space<vmem>>, vector<16x64xbf16>,
    %c2_i32 = arith.constant 2 : i32
    %c16_i32_24 = arith.constant 16 : i32
    %50 = arith.muli %c2_i32, %c16_i32_24 : i32
    %51 = tpu.assume_multiple %50, 16 : i32
    %52 = arith.index_cast %51 : i32 to index
    %c0_25 = arith.constant 0 : index
    %53 = vector.load %arg12[%52, %c0_25] : memref<128x64xf32, #tpu.memory_space<vmem>>, vector<16x64xf32>
    %cst_26 = arith.constant 0.899999976 : f32
    %54 = vector.broadcast %cst_26 : f32 to vector<16x64xf32>
    %55 = arith.mulf %54, %42 : vector<16x64xf32>
    %56 = arith.addf %55, %53 : vector<16x64xf32>
    %cst_27 = arith.constant 1.000000e+00 : f32
    %57 = vector.broadcast %cst_27 : f32 to vector<16x64xf32>
    %58 = arith.mulf %46, %57 : vector<16x64xf32>
    %59 = arith.subf %56, %58 : vector<16x64xf32>
    %cst_28 = arith.constant 1.000000e+00 : f32
    %60 = vector.broadcast %cst_28 : f32 to vector<16x64xf32>
    %61 = arith.cmpf ogt, %59, %60 : vector<16x64xf32>
    %62 = arith.extui %61 : vector<16x64xi1> to vector<16x64xi32>
    %63 = arith.sitofp %62 : vector<16x64xi32> to vector<16x64xf32>
    %64 = arith.truncf %63 : vector<16x64xf32> to vector<16x64xbf16>
    %65 = arith.index_cast %51 : i32 to index
    %c0_29 = arith.constant 0 : index
    %66 = vector.load %arg11[%65, %c0_29] : memref<128x64xbf16, #tpu.memory_space<vmem>>, vector<16x64xbf16>
    tpu.vector_store %arg11[%65, %c0_29], %64 {strides = array<i32>} : memref<128x64xbf16, #tpu.memory_space<vmem>>, vector<16x64xbf16>,
    %c3_i32 = arith.constant 3 : i32
    %c16_i32_30 = arith.constant 16 : i32
    %67 = arith.muli %c3_i32, %c16_i32_30 : i32
    %68 = tpu.assume_multiple %67, 16 : i32
    %69 = arith.index_cast %68 : i32 to index
    %c0_31 = arith.constant 0 : index
    %70 = vector.load %arg12[%69, %c0_31] : memref<128x64xf32, #tpu.memory_space<vmem>>, vector<16x64xf32>
    %cst_32 = arith.constant 0.899999976 : f32
    %71 = vector.broadcast %cst_32 : f32 to vector<16x64xf32>
    %72 = arith.mulf %71, %59 : vector<16x64xf32>
    %73 = arith.addf %72, %70 : vector<16x64xf32>
    %cst_33 = arith.constant 1.000000e+00 : f32
    %74 = vector.broadcast %cst_33 : f32 to vector<16x64xf32>
    %75 = arith.mulf %63, %74 : vector<16x64xf32>
    %76 = arith.subf %73, %75 : vector<16x64xf32>
    %cst_34 = arith.constant 1.000000e+00 : f32
    %77 = vector.broadcast %cst_34 : f32 to vector<16x64xf32>
    %78 = arith.cmpf ogt, %76, %77 : vector<16x64xf32>
    %79 = arith.extui %78 : vector<16x64xi1> to vector<16x64xi32>
    %80 = arith.sitofp %79 : vector<16x64xi32> to vector<16x64xf32>
    %81 = arith.truncf %80 : vector<16x64xf32> to vector<16x64xbf16>
    %82 = arith.index_cast %68 : i32 to index
    %c0_35 = arith.constant 0 : index
    %83 = vector.load %arg11[%82, %c0_35] : memref<128x64xbf16, #tpu.memory_space<vmem>>, vector<16x64xbf16>
    tpu.vector_store %arg11[%82, %c0_35], %81 {strides = array<i32>} : memref<128x64xbf16, #tpu.memory_space<vmem>>, vector<16x64xbf16>,
    %c4_i32 = arith.constant 4 : i32
    %c16_i32_36 = arith.constant 16 : i32
    %84 = arith.muli %c4_i32, %c16_i32_36 : i32
    %85 = tpu.assume_multiple %84, 16 : i32
    %86 = arith.index_cast %85 : i32 to index
    %c0_37 = arith.constant 0 : index
    %87 = vector.load %arg12[%86, %c0_37] : memref<128x64xf32, #tpu.memory_space<vmem>>, vector<16x64xf32>
    %cst_38 = arith.constant 0.899999976 : f32
    %88 = vector.broadcast %cst_38 : f32 to vector<16x64xf32>
    %89 = arith.mulf %88, %76 : vector<16x64xf32>
    %90 = arith.addf %89, %87 : vector<16x64xf32>
    %cst_39 = arith.constant 1.000000e+00 : f32
    %91 = vector.broadcast %cst_39 : f32 to vector<16x64xf32>
    %92 = arith.mulf %80, %91 : vector<16x64xf32>
    %93 = arith.subf %90, %92 : vector<16x64xf32>
    %cst_40 = arith.constant 1.000000e+00 : f32
    %94 = vector.broadcast %cst_40 : f32 to vector<16x64xf32>
    %95 = arith.cmpf ogt, %93, %94 : vector<16x64xf32>
    %96 = arith.extui %95 : vector<16x64xi1> to vector<16x64xi32>
    %97 = arith.sitofp %96 : vector<16x64xi32> to vector<16x64xf32>
    %98 = arith.truncf %97 : vector<16x64xf32> to vector<16x64xbf16>
    %99 = arith.index_cast %85 : i32 to index
    %c0_41 = arith.constant 0 : index
    %100 = vector.load %arg11[%99, %c0_41] : memref<128x64xbf16, #tpu.memory_space<vmem>>, vector<16x64xbf16>
    tpu.vector_store %arg11[%99, %c0_41], %98 {strides = array<i32>} : memref<128x64xbf16, #tpu.memory_space<vmem>>, vector<16x64xbf16>,
    %c5_i32 = arith.constant 5 : i32
    %c16_i32_42 = arith.constant 16 : i32
    %101 = arith.muli %c5_i32, %c16_i32_42 : i32
    %102 = tpu.assume_multiple %101, 16 : i32
    %103 = arith.index_cast %102 : i32 to index
    %c0_43 = arith.constant 0 : index
    %104 = vector.load %arg12[%103, %c0_43] : memref<128x64xf32, #tpu.memory_space<vmem>>, vector<16x64xf32>
    %cst_44 = arith.constant 0.899999976 : f32
    %105 = vector.broadcast %cst_44 : f32 to vector<16x64xf32>
    %106 = arith.mulf %105, %93 : vector<16x64xf32>
    %107 = arith.addf %106, %104 : vector<16x64xf32>
    %cst_45 = arith.constant 1.000000e+00 : f32
    %108 = vector.broadcast %cst_45 : f32 to vector<16x64xf32>
    %109 = arith.mulf %97, %108 : vector<16x64xf32>
    %110 = arith.subf %107, %109 : vector<16x64xf32>
    %cst_46 = arith.constant 1.000000e+00 : f32
    %111 = vector.broadcast %cst_46 : f32 to vector<16x64xf32>
    %112 = arith.cmpf ogt, %110, %111 : vector<16x64xf32>
    %113 = arith.extui %112 : vector<16x64xi1> to vector<16x64xi32>
    %114 = arith.sitofp %113 : vector<16x64xi32> to vector<16x64xf32>
    %115 = arith.truncf %114 : vector<16x64xf32> to vector<16x64xbf16>
    %116 = arith.index_cast %102 : i32 to index
    %c0_47 = arith.constant 0 : index
    %117 = vector.load %arg11[%116, %c0_47] : memref<128x64xbf16, #tpu.memory_space<vmem>>, vector<16x64xbf16>
    tpu.vector_store %arg11[%116, %c0_47], %115 {strides = array<i32>} : memref<128x64xbf16, #tpu.memory_space<vmem>>, vector<16x64xbf16>,
    %c6_i32 = arith.constant 6 : i32
    %c16_i32_48 = arith.constant 16 : i32
    %118 = arith.muli %c6_i32, %c16_i32_48 : i32
    %119 = tpu.assume_multiple %118, 16 : i32
    %120 = arith.index_cast %119 : i32 to index
    %c0_49 = arith.constant 0 : index
    %121 = vector.load %arg12[%120, %c0_49] : memref<128x64xf32, #tpu.memory_space<vmem>>, vector<16x64xf32>
    %cst_50 = arith.constant 0.899999976 : f32
    %122 = vector.broadcast %cst_50 : f32 to vector<16x64xf32>
    %123 = arith.mulf %122, %110 : vector<16x64xf32>
    %124 = arith.addf %123, %121 : vector<16x64xf32>
    %cst_51 = arith.constant 1.000000e+00 : f32
    %125 = vector.broadcast %cst_51 : f32 to vector<16x64xf32>
    %126 = arith.mulf %114, %125 : vector<16x64xf32>
    %127 = arith.subf %124, %126 : vector<16x64xf32>
    %cst_52 = arith.constant 1.000000e+00 : f32
    %128 = vector.broadcast %cst_52 : f32 to vector<16x64xf32>
    %129 = arith.cmpf ogt, %127, %128 : vector<16x64xf32>
    %130 = arith.extui %129 : vector<16x64xi1> to vector<16x64xi32>
    %131 = arith.sitofp %130 : vector<16x64xi32> to vector<16x64xf32>
    %132 = arith.truncf %131 : vector<16x64xf32> to vector<16x64xbf16>
    %133 = arith.index_cast %119 : i32 to index
    %c0_53 = arith.constant 0 : index
    %134 = vector.load %arg11[%133, %c0_53] : memref<128x64xbf16, #tpu.memory_space<vmem>>, vector<16x64xbf16>
    tpu.vector_store %arg11[%133, %c0_53], %132 {strides = array<i32>} : memref<128x64xbf16, #tpu.memory_space<vmem>>, vector<16x64xbf16>,
    %c7_i32 = arith.constant 7 : i32
    %c16_i32_54 = arith.constant 16 : i32
    %135 = arith.muli %c7_i32, %c16_i32_54 : i32
    %136 = tpu.assume_multiple %135, 16 : i32
    %137 = arith.index_cast %136 : i32 to index
    %c0_55 = arith.constant 0 : index
    %138 = vector.load %arg12[%137, %c0_55] : memref<128x64xf32, #tpu.memory_space<vmem>>, vector<16x64xf32>
    %cst_56 = arith.constant 0.899999976 : f32
    %139 = vector.broadcast %cst_56 : f32 to vector<16x64xf32>
    %140 = arith.mulf %139, %127 : vector<16x64xf32>
    %141 = arith.addf %140, %138 : vector<16x64xf32>
    %cst_57 = arith.constant 1.000000e+00 : f32
    %142 = vector.broadcast %cst_57 : f32 to vector<16x64xf32>
    %143 = arith.mulf %131, %142 : vector<16x64xf32>
    %144 = arith.subf %141, %143 : vector<16x64xf32>
    %cst_58 = arith.constant 1.000000e+00 : f32
    %145 = vector.broadcast %cst_58 : f32 to vector<16x64xf32>
    %146 = arith.cmpf ogt, %144, %145 : vector<16x64xf32>
    %147 = arith.extui %146 : vector<16x64xi1> to vector<16x64xi32>
    %148 = arith.sitofp %147 : vector<16x64xi32> to vector<16x64xf32>
    %149 = arith.truncf %148 : vector<16x64xf32> to vector<16x64xbf16>
    %150 = arith.index_cast %136 : i32 to index
    %c0_59 = arith.constant 0 : index
    %151 = vector.load %arg11[%150, %c0_59] : memref<128x64xbf16, #tpu.memory_space<vmem>>, vector<16x64xbf16>
    tpu.vector_store %arg11[%150, %c0_59], %149 {strides = array<i32>} : memref<128x64xbf16, #tpu.memory_space<vmem>>, vector<16x64xbf16>,
    %c8_i32 = arith.constant 8 : i32
    %c0_60 = arith.constant 0 : index
    %c0_61 = arith.constant 0 : index
    %152 = vector.load %arg9[%c0_60, %c0_61] : memref<16x64xf32, #tpu.memory_space<vmem>>, vector<16x64xf32>
    tpu.vector_store %arg9[%c0_60, %c0_61], %144 {strides = array<i32>} : memref<16x64xf32, #tpu.memory_space<vmem>>, vector<16x64xf32>,
    %c0_62 = arith.constant 0 : index
    %c0_63 = arith.constant 0 : index
    %153 = vector.load %arg11[%c0_62, %c0_63] : memref<128x64xbf16, #tpu.memory_space<vmem>>, vector<128x64xbf16>
    %c0_64 = arith.constant 0 : index
    %c0_65 = arith.constant 0 : index
    %154 = vector.load %arg5[%c0_64, %c0_65] : memref<64x16xbf16, #tpu.memory_space<vmem>>, vector<64x16xbf16>
    %cst_66 = arith.constant dense<0.000000e+00> : vector<128x16xf32>
    %155 = tpu.matmul %153, %154, %cst_66 {dimension_numbers = #tpu.dot_dimension_numbers<[1], [0], [0], [1], [0, 0, 1, 1], [], []>} : vector<128x64xbf16>, vector<64x16xbf16>, vector<128x16xf32> -> vector<128x16xf32>
    %c0_67 = arith.constant 0 : index
    %c0_68 = arith.constant 0 : index
    %156 = vector.load %arg6[%c0_67, %c0_68] : memref<1x16xf32, #tpu.memory_space<vmem>>, vector<1x16xf32>
    %157 = vector.broadcast %156 : vector<1x16xf32> to vector<128x16xf32>
    %158 = arith.addf %155, %157 : vector<128x16xf32>
    %c0_69 = arith.constant 0 : index
    %c0_70 = arith.constant 0 : index
    %159 = vector.load %arg13[%c0_69, %c0_70] : memref<128x16xf32, #tpu.memory_space<vmem>>, vector<128x16xf32>
    tpu.vector_store %arg13[%c0_69, %c0_70], %158 {strides = array<i32>} : memref<128x16xf32, #tpu.memory_space<vmem>>, vector<128x16xf32>,
    %c0_71 = arith.constant 0 : index
    %c0_72 = arith.constant 0 : index
    %160 = vector.load %arg10[%c0_71, %c0_72] : memref<16x16xf32, #tpu.memory_space<vmem>>, vector<16x16xf32>
    %cst_73 = arith.constant 1.000000e+00 : f32
    %161 = vector.broadcast %cst_73 : f32 to vector<16x16xf32>
    %162 = arith.cmpf ogt, %160, %161 : vector<16x16xf32>
    %163 = arith.extui %162 : vector<16x16xi1> to vector<16x16xi32>
    %164 = arith.sitofp %163 : vector<16x16xi32> to vector<16x16xf32>
    %c0_i32_74 = arith.constant 0 : i32
    %c16_i32_75 = arith.constant 16 : i32
    %165 = arith.muli %c0_i32_74, %c16_i32_75 : i32
    %166 = tpu.assume_multiple %165, 16 : i32
    %167 = arith.index_cast %166 : i32 to index
    %c0_76 = arith.constant 0 : index
    %168 = vector.load %arg13[%167, %c0_76] : memref<128x16xf32, #tpu.memory_space<vmem>>, vector<16x16xf32>
    %cst_77 = arith.constant 0.899999976 : f32
    %169 = vector.broadcast %cst_77 : f32 to vector<16x16xf32>
    %170 = arith.mulf %169, %160 : vector<16x16xf32>
    %171 = arith.addf %170, %168 : vector<16x16xf32>
    %cst_78 = arith.constant 1.000000e+00 : f32
    %172 = vector.broadcast %cst_78 : f32 to vector<16x16xf32>
    %173 = arith.mulf %164, %172 : vector<16x16xf32>
    %174 = arith.subf %171, %173 : vector<16x16xf32>
    %cst_79 = arith.constant 1.000000e+00 : f32
    %175 = vector.broadcast %cst_79 : f32 to vector<16x16xf32>
    %176 = arith.cmpf ogt, %174, %175 : vector<16x16xf32>
    %177 = arith.extui %176 : vector<16x16xi1> to vector<16x16xi32>
    %178 = arith.sitofp %177 : vector<16x16xi32> to vector<16x16xf32>
    %179 = arith.index_cast %c0_i32_74 : i32 to index
    %c0_80 = arith.constant 0 : index
    %c0_81 = arith.constant 0 : index
    %180 = vector.load %arg7[%179, %c0_80, %c0_81] : memref<8x16x16xf32, #tpu.memory_space<vmem>>, vector<1x16x16xf32>
    %181 = vector.shape_cast %180 : vector<1x16x16xf32> to vector<16x16xf32>
    %182 = vector.shape_cast %174 : vector<16x16xf32> to vector<1x16x16xf32>
    tpu.vector_store %arg7[%179, %c0_80, %c0_81], %182 {strides = array<i32>} : memref<8x16x16xf32, #tpu.memory_space<vmem>>, vector<1x16x16xf32>,
    %183 = arith.truncf %178 : vector<16x16xf32> to vector<16x16xbf16>
    %184 = arith.index_cast %c0_i32_74 : i32 to index
    %c0_82 = arith.constant 0 : index
    %c0_83 = arith.constant 0 : index
    %185 = vector.load %arg8[%184, %c0_82, %c0_83] : memref<8x16x16xbf16, #tpu.memory_space<vmem>>, vector<1x16x16xbf16>
    %186 = vector.shape_cast %185 : vector<1x16x16xbf16> to vector<16x16xbf16>
    %187 = vector.shape_cast %183 : vector<16x16xbf16> to vector<1x16x16xbf16>
    tpu.vector_store %arg8[%184, %c0_82, %c0_83], %187 {strides = array<i32>} : memref<8x16x16xbf16, #tpu.memory_space<vmem>>, vector<1x16x16xbf16>,
    %c1_i32_84 = arith.constant 1 : i32
    %c16_i32_85 = arith.constant 16 : i32
    %188 = arith.muli %c1_i32_84, %c16_i32_85 : i32
    %189 = tpu.assume_multiple %188, 16 : i32
    %190 = arith.index_cast %189 : i32 to index
    %c0_86 = arith.constant 0 : index
    %191 = vector.load %arg13[%190, %c0_86] : memref<128x16xf32, #tpu.memory_space<vmem>>, vector<16x16xf32>
    %cst_87 = arith.constant 0.899999976 : f32
    %192 = vector.broadcast %cst_87 : f32 to vector<16x16xf32>
    %193 = arith.mulf %192, %174 : vector<16x16xf32>
    %194 = arith.addf %193, %191 : vector<16x16xf32>
    %cst_88 = arith.constant 1.000000e+00 : f32
    %195 = vector.broadcast %cst_88 : f32 to vector<16x16xf32>
    %196 = arith.mulf %178, %195 : vector<16x16xf32>
    %197 = arith.subf %194, %196 : vector<16x16xf32>
    %cst_89 = arith.constant 1.000000e+00 : f32
    %198 = vector.broadcast %cst_89 : f32 to vector<16x16xf32>
    %199 = arith.cmpf ogt, %197, %198 : vector<16x16xf32>
    %200 = arith.extui %199 : vector<16x16xi1> to vector<16x16xi32>
    %201 = arith.sitofp %200 : vector<16x16xi32> to vector<16x16xf32>
    %202 = arith.index_cast %c1_i32_84 : i32 to index
    %c0_90 = arith.constant 0 : index
    %c0_91 = arith.constant 0 : index
    %203 = vector.load %arg7[%202, %c0_90, %c0_91] : memref<8x16x16xf32, #tpu.memory_space<vmem>>, vector<1x16x16xf32>
    %204 = vector.shape_cast %203 : vector<1x16x16xf32> to vector<16x16xf32>
    %205 = vector.shape_cast %197 : vector<16x16xf32> to vector<1x16x16xf32>
    tpu.vector_store %arg7[%202, %c0_90, %c0_91], %205 {strides = array<i32>} : memref<8x16x16xf32, #tpu.memory_space<vmem>>, vector<1x16x16xf32>,
    %206 = arith.truncf %201 : vector<16x16xf32> to vector<16x16xbf16>
    %207 = arith.index_cast %c1_i32_84 : i32 to index
    %c0_92 = arith.constant 0 : index
    %c0_93 = arith.constant 0 : index
    %208 = vector.load %arg8[%207, %c0_92, %c0_93] : memref<8x16x16xbf16, #tpu.memory_space<vmem>>, vector<1x16x16xbf16>
    %209 = vector.shape_cast %208 : vector<1x16x16xbf16> to vector<16x16xbf16>
    %210 = vector.shape_cast %206 : vector<16x16xbf16> to vector<1x16x16xbf16>
    tpu.vector_store %arg8[%207, %c0_92, %c0_93], %210 {strides = array<i32>} : memref<8x16x16xbf16, #tpu.memory_space<vmem>>, vector<1x16x16xbf16>,
    %c2_i32_94 = arith.constant 2 : i32
    %c16_i32_95 = arith.constant 16 : i32
    %211 = arith.muli %c2_i32_94, %c16_i32_95 : i32
    %212 = tpu.assume_multiple %211, 16 : i32
    %213 = arith.index_cast %212 : i32 to index
    %c0_96 = arith.constant 0 : index
    %214 = vector.load %arg13[%213, %c0_96] : memref<128x16xf32, #tpu.memory_space<vmem>>, vector<16x16xf32>
    %cst_97 = arith.constant 0.899999976 : f32
    %215 = vector.broadcast %cst_97 : f32 to vector<16x16xf32>
    %216 = arith.mulf %215, %197 : vector<16x16xf32>
    %217 = arith.addf %216, %214 : vector<16x16xf32>
    %cst_98 = arith.constant 1.000000e+00 : f32
    %218 = vector.broadcast %cst_98 : f32 to vector<16x16xf32>
    %219 = arith.mulf %201, %218 : vector<16x16xf32>
    %220 = arith.subf %217, %219 : vector<16x16xf32>
    %cst_99 = arith.constant 1.000000e+00 : f32
    %221 = vector.broadcast %cst_99 : f32 to vector<16x16xf32>
    %222 = arith.cmpf ogt, %220, %221 : vector<16x16xf32>
    %223 = arith.extui %222 : vector<16x16xi1> to vector<16x16xi32>
    %224 = arith.sitofp %223 : vector<16x16xi32> to vector<16x16xf32>
    %225 = arith.index_cast %c2_i32_94 : i32 to index
    %c0_100 = arith.constant 0 : index
    %c0_101 = arith.constant 0 : index
    %226 = vector.load %arg7[%225, %c0_100, %c0_101] : memref<8x16x16xf32, #tpu.memory_space<vmem>>, vector<1x16x16xf32>
    %227 = vector.shape_cast %226 : vector<1x16x16xf32> to vector<16x16xf32>
    %228 = vector.shape_cast %220 : vector<16x16xf32> to vector<1x16x16xf32>
    tpu.vector_store %arg7[%225, %c0_100, %c0_101], %228 {strides = array<i32>} : memref<8x16x16xf32, #tpu.memory_space<vmem>>, vector<1x16x16xf32>,
    %229 = arith.truncf %224 : vector<16x16xf32> to vector<16x16xbf16>
    %230 = arith.index_cast %c2_i32_94 : i32 to index
    %c0_102 = arith.constant 0 : index
    %c0_103 = arith.constant 0 : index
    %231 = vector.load %arg8[%230, %c0_102, %c0_103] : memref<8x16x16xbf16, #tpu.memory_space<vmem>>, vector<1x16x16xbf16>
    %232 = vector.shape_cast %231 : vector<1x16x16xbf16> to vector<16x16xbf16>
    %233 = vector.shape_cast %229 : vector<16x16xbf16> to vector<1x16x16xbf16>
    tpu.vector_store %arg8[%230, %c0_102, %c0_103], %233 {strides = array<i32>} : memref<8x16x16xbf16, #tpu.memory_space<vmem>>, vector<1x16x16xbf16>,
    %c3_i32_104 = arith.constant 3 : i32
    %c16_i32_105 = arith.constant 16 : i32
    %234 = arith.muli %c3_i32_104, %c16_i32_105 : i32
    %235 = tpu.assume_multiple %234, 16 : i32
    %236 = arith.index_cast %235 : i32 to index
    %c0_106 = arith.constant 0 : index
    %237 = vector.load %arg13[%236, %c0_106] : memref<128x16xf32, #tpu.memory_space<vmem>>, vector<16x16xf32>
    %cst_107 = arith.constant 0.899999976 : f32
    %238 = vector.broadcast %cst_107 : f32 to vector<16x16xf32>
    %239 = arith.mulf %238, %220 : vector<16x16xf32>
    %240 = arith.addf %239, %237 : vector<16x16xf32>
    %cst_108 = arith.constant 1.000000e+00 : f32
    %241 = vector.broadcast %cst_108 : f32 to vector<16x16xf32>
    %242 = arith.mulf %224, %241 : vector<16x16xf32>
    %243 = arith.subf %240, %242 : vector<16x16xf32>
    %cst_109 = arith.constant 1.000000e+00 : f32
    %244 = vector.broadcast %cst_109 : f32 to vector<16x16xf32>
    %245 = arith.cmpf ogt, %243, %244 : vector<16x16xf32>
    %246 = arith.extui %245 : vector<16x16xi1> to vector<16x16xi32>
    %247 = arith.sitofp %246 : vector<16x16xi32> to vector<16x16xf32>
    %248 = arith.index_cast %c3_i32_104 : i32 to index
    %c0_110 = arith.constant 0 : index
    %c0_111 = arith.constant 0 : index
    %249 = vector.load %arg7[%248, %c0_110, %c0_111] : memref<8x16x16xf32, #tpu.memory_space<vmem>>, vector<1x16x16xf32>
    %250 = vector.shape_cast %249 : vector<1x16x16xf32> to vector<16x16xf32>
    %251 = vector.shape_cast %243 : vector<16x16xf32> to vector<1x16x16xf32>
    tpu.vector_store %arg7[%248, %c0_110, %c0_111], %251 {strides = array<i32>} : memref<8x16x16xf32, #tpu.memory_space<vmem>>, vector<1x16x16xf32>,
    %252 = arith.truncf %247 : vector<16x16xf32> to vector<16x16xbf16>
    %253 = arith.index_cast %c3_i32_104 : i32 to index
    %c0_112 = arith.constant 0 : index
    %c0_113 = arith.constant 0 : index
    %254 = vector.load %arg8[%253, %c0_112, %c0_113] : memref<8x16x16xbf16, #tpu.memory_space<vmem>>, vector<1x16x16xbf16>
    %255 = vector.shape_cast %254 : vector<1x16x16xbf16> to vector<16x16xbf16>
    %256 = vector.shape_cast %252 : vector<16x16xbf16> to vector<1x16x16xbf16>
    tpu.vector_store %arg8[%253, %c0_112, %c0_113], %256 {strides = array<i32>} : memref<8x16x16xbf16, #tpu.memory_space<vmem>>, vector<1x16x16xbf16>,
    %c4_i32_114 = arith.constant 4 : i32
    %c16_i32_115 = arith.constant 16 : i32
    %257 = arith.muli %c4_i32_114, %c16_i32_115 : i32
    %258 = tpu.assume_multiple %257, 16 : i32
    %259 = arith.index_cast %258 : i32 to index
    %c0_116 = arith.constant 0 : index
    %260 = vector.load %arg13[%259, %c0_116] : memref<128x16xf32, #tpu.memory_space<vmem>>, vector<16x16xf32>
    %cst_117 = arith.constant 0.899999976 : f32
    %261 = vector.broadcast %cst_117 : f32 to vector<16x16xf32>
    %262 = arith.mulf %261, %243 : vector<16x16xf32>
    %263 = arith.addf %262, %260 : vector<16x16xf32>
    %cst_118 = arith.constant 1.000000e+00 : f32
    %264 = vector.broadcast %cst_118 : f32 to vector<16x16xf32>
    %265 = arith.mulf %247, %264 : vector<16x16xf32>
    %266 = arith.subf %263, %265 : vector<16x16xf32>
    %cst_119 = arith.constant 1.000000e+00 : f32
    %267 = vector.broadcast %cst_119 : f32 to vector<16x16xf32>
    %268 = arith.cmpf ogt, %266, %267 : vector<16x16xf32>
    %269 = arith.extui %268 : vector<16x16xi1> to vector<16x16xi32>
    %270 = arith.sitofp %269 : vector<16x16xi32> to vector<16x16xf32>
    %271 = arith.index_cast %c4_i32_114 : i32 to index
    %c0_120 = arith.constant 0 : index
    %c0_121 = arith.constant 0 : index
    %272 = vector.load %arg7[%271, %c0_120, %c0_121] : memref<8x16x16xf32, #tpu.memory_space<vmem>>, vector<1x16x16xf32>
    %273 = vector.shape_cast %272 : vector<1x16x16xf32> to vector<16x16xf32>
    %274 = vector.shape_cast %266 : vector<16x16xf32> to vector<1x16x16xf32>
    tpu.vector_store %arg7[%271, %c0_120, %c0_121], %274 {strides = array<i32>} : memref<8x16x16xf32, #tpu.memory_space<vmem>>, vector<1x16x16xf32>,
    %275 = arith.truncf %270 : vector<16x16xf32> to vector<16x16xbf16>
    %276 = arith.index_cast %c4_i32_114 : i32 to index
    %c0_122 = arith.constant 0 : index
    %c0_123 = arith.constant 0 : index
    %277 = vector.load %arg8[%276, %c0_122, %c0_123] : memref<8x16x16xbf16, #tpu.memory_space<vmem>>, vector<1x16x16xbf16>
    %278 = vector.shape_cast %277 : vector<1x16x16xbf16> to vector<16x16xbf16>
    %279 = vector.shape_cast %275 : vector<16x16xbf16> to vector<1x16x16xbf16>
    tpu.vector_store %arg8[%276, %c0_122, %c0_123], %279 {strides = array<i32>} : memref<8x16x16xbf16, #tpu.memory_space<vmem>>, vector<1x16x16xbf16>,
    %c5_i32_124 = arith.constant 5 : i32
    %c16_i32_125 = arith.constant 16 : i32
    %280 = arith.muli %c5_i32_124, %c16_i32_125 : i32
    %281 = tpu.assume_multiple %280, 16 : i32
    %282 = arith.index_cast %281 : i32 to index
    %c0_126 = arith.constant 0 : index
    %283 = vector.load %arg13[%282, %c0_126] : memref<128x16xf32, #tpu.memory_space<vmem>>, vector<16x16xf32>
    %cst_127 = arith.constant 0.899999976 : f32
    %284 = vector.broadcast %cst_127 : f32 to vector<16x16xf32>
    %285 = arith.mulf %284, %266 : vector<16x16xf32>
    %286 = arith.addf %285, %283 : vector<16x16xf32>
    %cst_128 = arith.constant 1.000000e+00 : f32
    %287 = vector.broadcast %cst_128 : f32 to vector<16x16xf32>
    %288 = arith.mulf %270, %287 : vector<16x16xf32>
    %289 = arith.subf %286, %288 : vector<16x16xf32>
    %cst_129 = arith.constant 1.000000e+00 : f32
    %290 = vector.broadcast %cst_129 : f32 to vector<16x16xf32>
    %291 = arith.cmpf ogt, %289, %290 : vector<16x16xf32>
    %292 = arith.extui %291 : vector<16x16xi1> to vector<16x16xi32>
    %293 = arith.sitofp %292 : vector<16x16xi32> to vector<16x16xf32>
    %294 = arith.index_cast %c5_i32_124 : i32 to index
    %c0_130 = arith.constant 0 : index
    %c0_131 = arith.constant 0 : index
    %295 = vector.load %arg7[%294, %c0_130, %c0_131] : memref<8x16x16xf32, #tpu.memory_space<vmem>>, vector<1x16x16xf32>
    %296 = vector.shape_cast %295 : vector<1x16x16xf32> to vector<16x16xf32>
    %297 = vector.shape_cast %289 : vector<16x16xf32> to vector<1x16x16xf32>
    tpu.vector_store %arg7[%294, %c0_130, %c0_131], %297 {strides = array<i32>} : memref<8x16x16xf32, #tpu.memory_space<vmem>>, vector<1x16x16xf32>,
    %298 = arith.truncf %293 : vector<16x16xf32> to vector<16x16xbf16>
    %299 = arith.index_cast %c5_i32_124 : i32 to index
    %c0_132 = arith.constant 0 : index
    %c0_133 = arith.constant 0 : index
    %300 = vector.load %arg8[%299, %c0_132, %c0_133] : memref<8x16x16xbf16, #tpu.memory_space<vmem>>, vector<1x16x16xbf16>
    %301 = vector.shape_cast %300 : vector<1x16x16xbf16> to vector<16x16xbf16>
    %302 = vector.shape_cast %298 : vector<16x16xbf16> to vector<1x16x16xbf16>
    tpu.vector_store %arg8[%299, %c0_132, %c0_133], %302 {strides = array<i32>} : memref<8x16x16xbf16, #tpu.memory_space<vmem>>, vector<1x16x16xbf16>,
    %c6_i32_134 = arith.constant 6 : i32
    %c16_i32_135 = arith.constant 16 : i32
    %303 = arith.muli %c6_i32_134, %c16_i32_135 : i32
    %304 = tpu.assume_multiple %303, 16 : i32
    %305 = arith.index_cast %304 : i32 to index
    %c0_136 = arith.constant 0 : index
    %306 = vector.load %arg13[%305, %c0_136] : memref<128x16xf32, #tpu.memory_space<vmem>>, vector<16x16xf32>
    %cst_137 = arith.constant 0.899999976 : f32
    %307 = vector.broadcast %cst_137 : f32 to vector<16x16xf32>
    %308 = arith.mulf %307, %289 : vector<16x16xf32>
    %309 = arith.addf %308, %306 : vector<16x16xf32>
    %cst_138 = arith.constant 1.000000e+00 : f32
    %310 = vector.broadcast %cst_138 : f32 to vector<16x16xf32>
    %311 = arith.mulf %293, %310 : vector<16x16xf32>
    %312 = arith.subf %309, %311 : vector<16x16xf32>
    %cst_139 = arith.constant 1.000000e+00 : f32
    %313 = vector.broadcast %cst_139 : f32 to vector<16x16xf32>
    %314 = arith.cmpf ogt, %312, %313 : vector<16x16xf32>
    %315 = arith.extui %314 : vector<16x16xi1> to vector<16x16xi32>
    %316 = arith.sitofp %315 : vector<16x16xi32> to vector<16x16xf32>
    %317 = arith.index_cast %c6_i32_134 : i32 to index
    %c0_140 = arith.constant 0 : index
    %c0_141 = arith.constant 0 : index
    %318 = vector.load %arg7[%317, %c0_140, %c0_141] : memref<8x16x16xf32, #tpu.memory_space<vmem>>, vector<1x16x16xf32>
    %319 = vector.shape_cast %318 : vector<1x16x16xf32> to vector<16x16xf32>
    %320 = vector.shape_cast %312 : vector<16x16xf32> to vector<1x16x16xf32>
    tpu.vector_store %arg7[%317, %c0_140, %c0_141], %320 {strides = array<i32>} : memref<8x16x16xf32, #tpu.memory_space<vmem>>, vector<1x16x16xf32>,
    %321 = arith.truncf %316 : vector<16x16xf32> to vector<16x16xbf16>
    %322 = arith.index_cast %c6_i32_134 : i32 to index
    %c0_142 = arith.constant 0 : index
    %c0_143 = arith.constant 0 : index
    %323 = vector.load %arg8[%322, %c0_142, %c0_143] : memref<8x16x16xbf16, #tpu.memory_space<vmem>>, vector<1x16x16xbf16>
    %324 = vector.shape_cast %323 : vector<1x16x16xbf16> to vector<16x16xbf16>
    %325 = vector.shape_cast %321 : vector<16x16xbf16> to vector<1x16x16xbf16>
    tpu.vector_store %arg8[%322, %c0_142, %c0_143], %325 {strides = array<i32>} : memref<8x16x16xbf16, #tpu.memory_space<vmem>>, vector<1x16x16xbf16>,
    %c7_i32_144 = arith.constant 7 : i32
    %c16_i32_145 = arith.constant 16 : i32
    %326 = arith.muli %c7_i32_144, %c16_i32_145 : i32
    %327 = tpu.assume_multiple %326, 16 : i32
    %328 = arith.index_cast %327 : i32 to index
    %c0_146 = arith.constant 0 : index
    %329 = vector.load %arg13[%328, %c0_146] : memref<128x16xf32, #tpu.memory_space<vmem>>, vector<16x16xf32>
    %cst_147 = arith.constant 0.899999976 : f32
    %330 = vector.broadcast %cst_147 : f32 to vector<16x16xf32>
    %331 = arith.mulf %330, %312 : vector<16x16xf32>
    %332 = arith.addf %331, %329 : vector<16x16xf32>
    %cst_148 = arith.constant 1.000000e+00 : f32
    %333 = vector.broadcast %cst_148 : f32 to vector<16x16xf32>
    %334 = arith.mulf %316, %333 : vector<16x16xf32>
    %335 = arith.subf %332, %334 : vector<16x16xf32>
    %cst_149 = arith.constant 1.000000e+00 : f32
    %336 = vector.broadcast %cst_149 : f32 to vector<16x16xf32>
    %337 = arith.cmpf ogt, %335, %336 : vector<16x16xf32>
    %338 = arith.extui %337 : vector<16x16xi1> to vector<16x16xi32>
    %339 = arith.sitofp %338 : vector<16x16xi32> to vector<16x16xf32>
    %340 = arith.index_cast %c7_i32_144 : i32 to index
    %c0_150 = arith.constant 0 : index
    %c0_151 = arith.constant 0 : index
    %341 = vector.load %arg7[%340, %c0_150, %c0_151] : memref<8x16x16xf32, #tpu.memory_space<vmem>>, vector<1x16x16xf32>
    %342 = vector.shape_cast %341 : vector<1x16x16xf32> to vector<16x16xf32>
    %343 = vector.shape_cast %335 : vector<16x16xf32> to vector<1x16x16xf32>
    tpu.vector_store %arg7[%340, %c0_150, %c0_151], %343 {strides = array<i32>} : memref<8x16x16xf32, #tpu.memory_space<vmem>>, vector<1x16x16xf32>,
    %344 = arith.truncf %339 : vector<16x16xf32> to vector<16x16xbf16>
    %345 = arith.index_cast %c7_i32_144 : i32 to index
    %c0_152 = arith.constant 0 : index
    %c0_153 = arith.constant 0 : index
    %346 = vector.load %arg8[%345, %c0_152, %c0_153] : memref<8x16x16xbf16, #tpu.memory_space<vmem>>, vector<1x16x16xbf16>
    %347 = vector.shape_cast %346 : vector<1x16x16xbf16> to vector<16x16xbf16>
    %348 = vector.shape_cast %344 : vector<16x16xbf16> to vector<1x16x16xbf16>
    tpu.vector_store %arg8[%345, %c0_152, %c0_153], %348 {strides = array<i32>} : memref<8x16x16xbf16, #tpu.memory_space<vmem>>, vector<1x16x16xbf16>,
    %c8_i32_154 = arith.constant 8 : i32
    %c0_155 = arith.constant 0 : index
    %c0_156 = arith.constant 0 : index
    %349 = vector.load %arg10[%c0_155, %c0_156] : memref<16x16xf32, #tpu.memory_space<vmem>>, vector<16x16xf32>
    tpu.vector_store %arg10[%c0_155, %c0_156], %335 {strides = array<i32>} : memref<16x16xf32, #tpu.memory_space<vmem>>, vector<16x16xf32>,
    return
  }
  func.func @transform_0(%arg0: i32, %arg1: i32) -> (i32, i32, i32) {
    %c0_i32 = arith.constant 0 : i32
    %c0_i32_0 = arith.constant 0 : i32
    return %arg1, %arg0, %c0_i32 : i32, i32, i32
  }
  func.func @transform_1(%arg0: i32, %arg1: i32) -> (i32, i32) {
    %c0_i32 = arith.constant 0 : i32
    %c0_i32_0 = arith.constant 0 : i32
    %c0_i32_1 = arith.constant 0 : i32
    return %c0_i32, %c0_i32_0 : i32, i32
  }
  func.func @transform_2(%arg0: i32, %arg1: i32) -> (i32, i32) {
    %c0_i32 = arith.constant 0 : i32
    %c0_i32_0 = arith.constant 0 : i32
    %c0_i32_1 = arith.constant 0 : i32
    return %c0_i32, %c0_i32_0 : i32, i32
  }
  func.func @transform_3(%arg0: i32, %arg1: i32) -> (i32, i32) {
    %c0_i32 = arith.constant 0 : i32
    %c0_i32_0 = arith.constant 0 : i32
    %c0_i32_1 = arith.constant 0 : i32
    return %c0_i32, %c0_i32_0 : i32, i32
  }
  func.func @transform_4(%arg0: i32, %arg1: i32) -> (i32, i32) {
    %c0_i32 = arith.constant 0 : i32
    %c0_i32_0 = arith.constant 0 : i32
    %c0_i32_1 = arith.constant 0 : i32
    return %c0_i32, %c0_i32_0 : i32, i32
  }
  func.func @transform_5(%arg0: i32, %arg1: i32) -> (i32, i32, i32) {
    %c0_i32 = arith.constant 0 : i32
    %c0_i32_0 = arith.constant 0 : i32
    return %arg1, %arg0, %c0_i32 : i32, i32, i32
  }
  func.func @transform_6(%arg0: i32, %arg1: i32) -> (i32, i32, i32) {
    %c0_i32 = arith.constant 0 : i32
    %c0_i32_0 = arith.constant 0 : i32
    return %arg1, %arg0, %c0_i32 : i32, i32, i32
  }
}

</mosaic_0001>

<bundles_post_ra>
// kernel: tpu_custom_call.1
= control target key start
LH: loop header
LB: loop body
LE: loop exit
PB: predicated region body
PF: predicated region fallthrough
CT: control target
= control target key end

     0   :  { %12 = vsyncpa [#allocation8], 0  ;;  %s2292_s0 = inlined_call_operand.hbm [shape: bf16[16,32,32], index: 0, kind: input, shape index: {}]   ;;  %s2293_s1 = inlined_call_operand.vmem [shape: bf16[32,64], index: 1, kind: input, shape index: {}]   ;;  %s2294_s2 = inlined_call_operand.vmem [shape: f32[1,64], index: 2, kind: input, shape index: {}]   ;;  %s2295_s3 = inlined_call_operand.vmem [shape: bf16[64,16], index: 3, kind: input, shape index: {}]   ;;  %s2296_s4 = inlined_call_operand.vmem [shape: f32[1,16], index: 4, kind: input, shape index: {}]   ;;  %s2297_s5 = inlined_call_operand.vmem [shape: f32[16,32,16], index: 5, kind: output, shape index: {0}]   ;;  %s2298_s6 = inlined_call_operand.vmem [shape: bf16[16,32,16], index: 6, kind: output, shape index: {1}]  }
   0x1   :  { %14 = vsyncpa [#allocation8 + $0x1], 0  ;;  %s1889_s21 = smov 0   ;;  %s1891_s22 = smov 0  }
   0x2   :  { %s1893_s23 = smov 0   ;;  %s1895_s24 = smov 0  }
   0x3   :  { %s1897_s25 = smov 0   ;;  %s1899_s26 = smov 0  }
   0x4   :  { %s1901_s27 = smov 0   ;;  %s1903_s28 = smov 0  }
   0x5 LB: > { %2302 = sst [smem:[#allocation15_spill]] %s1840_s27  ;;  %s29_s29 = sadd.s32 1, %s1836_s26  ;;  %s1844_s28 = sphi %s1903_s28, %s20_s28   ;;  %s1840_s27 = sphi %s1901_s27, %s2310_s27   ;;  %s1836_s26 = sphi %s1899_s26, %s2315_s26   ;;  %s1832_s25 = sphi %s1897_s25, %s2308_s25   ;;  %s1828_s24 = sphi %s1895_s24, %s2314_s24   ;;  %s1824_s23 = sphi %s1893_s23, %s2313_s23   ;;  %s1820_s22 = sphi %s1891_s22, %s2312_s22   ;;  %s1816_s21 = sphi %s1889_s21, %s2311_s21  }
   0x6   : > { %p30_p0 = scmp.ge.s32.totalorder %s29_s29, 2  ;;  %s32_s30 = sadd.s32 1, %s1840_s27 }
   0x7   : > { %s1458_s7 = sadd.s32 4294967295, %s1844_s28   ;;  %p48_p1 = scmp.ne.s32.totalorder %s1824_s23, %s1820_s22 }
   0x8   : > { %s2317_s29 = smov (%p30_p0, %s29_s29), 0  ;;  %s2319_s30 = smov (!%p30_p0, %s32_s30), %s1840_s27 }
   0x9   : > { %2303 = sst [smem:[#allocation16_spill]] %s2317_s29  ;;  %s36_s8 = ssub.s32 %s1836_s26, %s2317_s29 }
   0xa   : > { %p49_p2 = scmp.eq.s32.totalorder %s1844_s28, 0  ;;  %p34_p3 = scmp.ge.s32.totalorder %s2319_s30, 2 }
   0xb   : > { %p54_p4 = scmp.ne.s32.totalorder %s1820_s22, %s1816_s21  ;;  %p55_p6 = scmp.eq.s32.totalorder %s1458_s7, 0 }
   0xc   : > { %p1942_p5 = por %p49_p2, %p48_p1  ;;  %s2321_s30 = smov (%p34_p3, %s2319_s30), 0 }
   0xd   : > { %2305 = sst [smem:[#allocation17_spill]] %s2321_s30  ;;  %p1948_p7 = por %p55_p6, %p54_p4 }
   0xe   : > { %p164_p8 = scmp.eq.s32.totalorder %s1458_s7, 3  ;;  %s37_s11 = ssub.s32 %s1840_s27, %s2321_s30 }
   0xf   : > { %s41_s12 = sadd.s32 1, %s1824_s23  ;;  %s38_s13 = sor.u32 %s37_s11, %s36_s8 }
  0x10   : > { %p1958_p9 = por %p164_p8, %p48_p1  ;;  %p39_p10 = scmp.eq.s32.totalorder %s38_s13, 0 }
  0x11   : > { %p1461_p11 = scmp.ge.s32.totalorder %s1844_s28, 4 }
  0x12   : > { %s1963_s15 = scalar_select %p39_p10, %s1824_s23, %s41_s12  }
  0x13   : > { %226 = sbr.rel (%p1461_p11) target bundleno = 42 (0x2a), region = 32 }
  0x1a   : > { %s230_s16 = sand.u32 1, %s1824_s23   ;;  %s1464_s17 = sshll.u32 %s1840_s27, 1 }
  0x1b   : > { %s1462_s18 = sshll.u32 %s230_s16, 6  ;;  %s1598_s19 = sshll.u32 %s1836_s26, 5 }
  0x1c   : > { %s241_s20 = sadd.s32 %s1598_s19, %s1464_s17  ;;  %s234_s21 = scalar_lea.vmem [#allocation7], %s1462_s18 }
  0x1d   : > { %s256_s7 = sshll.u32 %s234_s21, 4  ;;  %s1466_s8 = sshll.u32 %s241_s20, 6  ;;  %s257_s7 = int_to_ptr.vmem [resolvable:$true] %s256_s7 }
  0x1e   : > { %s1683_s11 = scalar_select %p1942_p5, [#allocation0], [#allocation13] }
  0x1f   : > { %s1846_s12 = smov 256   ;;  %s1847_s30 = smov 128  }
  0x20   : > { %1684 = sst [smem:[#allocation12]] (%p1942_p5), %s1846_s12  ;;  %s1848_s29 = smov 2  }
  0x21   : > { %s248_s13 = sld [smem:[%s1683_s11]]   ;;  %s1849_s17 = smov 64  }
  0x22   : > { %1685 = sst [smem:[#allocation12 + $0x1]] (%p1942_p5), %s1847_s30  ;;  %s243_s20 = scalar_lea.hbm %s2292_s0, %s1466_s8 }
  0x23   : > { %1686 = sst [smem:[#allocation12 + $0x2]] (%p1942_p5), %s1848_s29  ;;  %s1850_s21 = smov 4  }
  0x24   : > { %1687 = sst [smem:[#allocation12 + $0x3]] (%p1942_p5), %s1849_s17  ;;  %s231_s27 = scalar_lea.sflag [#allocation8], %s230_s16 }
  0x25   : > { %1688 = sst [smem:[#allocation12 + $0x4]] (%p1942_p5), %s1849_s17  ;;  %s1851_s30 = smov [#allocation11]  }
  0x26   : > { %1689 = sst [smem:[#allocation12 + $0x5]] (%p1942_p5), %s1850_s21 }
  0x27   : > { %s1467_s11 = sshll.u32 %s248_s13, 26 }
  0x28   : > { %s1468_s12 = sadd.s32 134217728, %s1467_s11 }
  0x29   : > { %1690 = dma.general (%p1942_p5), %s243_s20, 1024, %s257_s7, %s231_s27, %s1851_s30, [#allocation12], %s1468_s12, 0  }
  0x2a PF: > { %p1469_p12 = scmp.ge.s32.totalorder %s1844_s28, 1  ;;  %p277_p13 = scmp.lt.s32.totalorder %s1844_s28, 5 }
  0x2c   : > { %p278_p0 = pnand %p1469_p12, %p277_p13 }
  0x2d   : > { %s283_s29 = sand.u32 (!%p278_p0), 1, %s1820_s22  }
  0x2e   : > { %281 = sbr.rel (%p278_p0) target bundleno = 610 (0x262), region = 40  ;;  %s1470_s8 = sshll.u32 (!%p278_p0), %s283_s29, 6 }
  0x2f   : > { %s284_s17 = scalar_lea.sflag (!%p278_p0), [#allocation8], %s283_s29  ;;  %s1991_s18 = scalar_lea.vmem (!%p278_p0), [#allocation7], %s1470_s8 }
  0x35   : > { %1811 = dma.done.wait (%p1948_p7), %s284_s17, 1024  }
  0x36   : > { %1813 = vsyncadd (%p1948_p7), %s284_s17, 4294966272  ;;  %s1471_s27 = sshll.u32 %s283_s29, 7  ;;  %s1999_s16 = scalar_lea.vmem [#allocation10], %s1470_s8 }
  0x37   : > { %s1997_s9 = scalar_lea.vmem [#allocation9], %s1471_s27  ;;  %p1473_p1 = scmp.ne.s32.totalorder %s1828_s24, 0 }
  0x38   : > { %vm330_vm0 = vcmask (!%p1473_p1), 523264   ;;  %vm333_vm1 = vcmask (!%p1473_p1), 130048   ;;  %v1852_v0 = vmov (!%p1473_p1), 0.0  }
  0x39   : > { %329 = sbr.rel (%p1473_p1) target bundleno = 64 (0x40), region = 48  ;;  %331 = vst.msk [vmem:[#allocation2] sm:$0xff] (!%p1473_p1), %vm330_vm0, %v1852_v0  ;;  %332 = vst.msk [vmem:[#allocation2 + $0x8] sm:$0xff] (!%p1473_p1), %vm330_vm0, %v1852_v0 }
  0x3a   : > { %334 = vst.msk [vmem:[#allocation3] sm:$0xff] (!%p1473_p1), %vm333_vm1, %v1852_v0  ;;  %335 = vst.msk [vmem:[#allocation3 + $0x8] sm:$0xff] (!%p1473_p1), %vm333_vm1, %v1852_v0 }
  0x40 PF: > { %v1764_v1 = vld [vmem:[%s2293_s1] sm:$0xff]   ;;  %v1765_v2 = vld [vmem:[%s2293_s1 + $0x8] sm:$0xff]   ;;  %vm415_vm2 = vcmask 261120   ;;  %v1768_v5 = vld [vmem:[%s1991_s18 + $0x10] sm:$0xff]   ;;  %vm537_vm3 = vcmask 523264   ;;  %v1853_v33 = vmov 0.0  }
  0x41   : > { %1639 = vmatprep.subr.bf16.mxu0 %v1764_v1  ;;  %v1766_v3 = vld [vmem:[%s1991_s18] sm:$0xff]   ;;  %v1767_v4 = vld [vmem:[%s1991_s18 + $0x8] sm:$0xff]   ;;  %v1769_v6 = vld [vmem:[%s1991_s18 + $0x18] sm:$0xff]   ;;  %s1589_s10 = sshll.u32 (%p1958_p9), %s1832_s25, 1  ;;  %s1615_s19 = sshll.u32 (%p1958_p9), %s1828_s24, 5 }
  0x42   : > { %1640 = vmatpush3.bf16.msra.mxu0 %v1764_v1  ;;  %1643 = vmatprep.mubr.msk.bf16.mxu0 %vm415_vm2, %v1766_v3  ;;  %v1770_v7 = vld [vmem:[%s1991_s18 + $0x20] sm:$0xff]   ;;  %v1771_v8 = vld [vmem:[%s1991_s18 + $0x28] sm:$0xff]   ;;  %v1772_v9 = vld [vmem:[%s1991_s18 + $0x30] sm:$0xff]   ;;  %s1145_s20 = sadd.s32 (%p1958_p9), %s1615_s19, %s1589_s10 }
  0x43   : > { %1641 = vmatprep.subr.bf16.mxu0 %v1765_v2  ;;  %v1773_v10 = vld [vmem:[%s1991_s18 + $0x38] sm:$0xff]   ;;  %v1774_v11 = vld [vmem:[%s2295_s3] sm:$0xff]   ;;  %v1775_v12 = vld [vmem:[%s2295_s3 + $0x8] sm:$0xff]   ;;  %s1591_s21 = sshll.u32 (%p1958_p9), %s1145_s20, 3 }
  0x44   : > { %1659 = vmatprep.subr.bf16.mxu1 %v1774_v11  ;;  %v1776_v13 = vld [vmem:[%s2295_s3 + $0x10] sm:$0xff]   ;;  %v1777_v14 = vld [vmem:[%s2295_s3 + $0x18] sm:$0xff]   ;;  %v2039_v15 = vld [vmem:[%s2294_s2] ss:$0 sm:$0xff]  ;;  %s1147_s30 = scalar_lea.vmem (%p1958_p9), %s2297_s5, %s1591_s21 }
  0x45   : > { %1660 = vmatpush3.bf16.msra.mxu1 %v1774_v11  ;;  %v554_v24 = vld [vmem:[#allocation2] sm:$0xff]  ;;  %v555_v25 = vld [vmem:[#allocation2 + $0x8] sm:$0xff] }
  0x46   : > { %1642 = vmatpush3.bf16.msra.mxu0 %v1765_v2  ;;  %1661 = vmatprep.subr.bf16.mxu1 %v1775_v12  ;;  %vm556_vm4 = vcmp.gt.f32.partialorder %v554_v24, 1.0  ;;  %v564_v26 = vmul.f32 0.9, %v554_v24  ;;  %vm557_vm5 = vcmp.gt.f32.partialorder %v555_v25, 1.0  ;;  %v565_v30 = vmul.f32 0.9, %v555_v25 }
  0x47   : > { %v1493_v34 = vsel %vm556_vm4, 1.0, %v1853_v33  ;;  %v1494_v40 = vsel %vm557_vm5, 1.0, %v1853_v33 }
  0x49   : > { %1644 = vmatmul.mubr.msk.bf16.vlgmr.msra.gmra.mrb[0].mxu0 %vm415_vm2, %v1767_v4  ;;  %1662 = vmatpush3.bf16.msra.mxu1 %v1775_v12 }
  0x4a   : > { %1647 = vmatprep.mubr.msk.bf16.mxu0 %vm415_vm2, %v1768_v5  ;;  %1663 = vmatprep.subr.bf16.mxu1 %v1776_v13 }
  0x4d   : > { %1664 = vmatpush3.bf16.msra.mxu1 %v1776_v13 }
  0x4e   : > { %1665 = vmatprep.subr.bf16.mxu1 %v1777_v14 }
  0x51   : > { %1648 = vmatmul.mubr.msk.bf16.gmra.mrb[4].mxu0 %vm415_vm2, %v1769_v6  ;;  %1666 = vmatpush3.bf16.msra.mxu1 %v1777_v14 }
  0x52   : > { %1651 = vmatprep.mubr.msk.bf16.mxu0 %vm415_vm2, %v1770_v7 }
  0x59   : > { %1652 = vmatmul.mubr.msk.bf16.gmra.mrb[8].mxu0 %vm415_vm2, %v1771_v8 }
  0x5a   : > { %1655 = vmatprep.mubr.msk.bf16.mxu0 %vm415_vm2, %v1772_v9 }
  0x61   : > { %1656 = vmatmul.mubr.msk.bf16.gmra.mrb[12].mxu0 %vm415_vm2, %v1773_v10 }
 0x11c   : > { %v1645_v16 = vpop.f32.mrb[0].mxu0 }
 0x11d   : > { %v483_v17 = vadd.f32 %v1645_v16, %v2039_v15  ;;  %v474_v18 = vpop.f32.mrb[1].mxu0 }
 0x11e   : > { %v475_v19 = vadd.f32 %v2039_v15, %v474_v18  ;;  %v1646_v20 = vpop.f32.mrb[2].mxu0 }
 0x11f   : > { %540 = vst.msk [vmem:[#allocation5 + $0x10] sm:$0xff] %vm537_vm3, %v483_v17  ;;  %v486_v21 = vadd.f32 %v1646_v20, %v2039_v15  ;;  %v477_v22 = vpop.f32.mrb[3].mxu0 }
 0x120   : > { %538 = vst.msk [vmem:[#allocation5] sm:$0xff] %vm537_vm3, %v475_v19  ;;  %v478_v23 = vadd.f32 %v2039_v15, %v477_v22 }
 0x121   : > { %541 = vst.msk [vmem:[#allocation5 + $0x18] sm:$0xff] %vm537_vm3, %v486_v21 }
 0x122   : > { %539 = vst.msk [vmem:[#allocation5 + $0x8] sm:$0xff] %vm537_vm3, %v478_v23 }
 0x124   : > { %v1649_v27 = vpop.f32.mrb[4].mxu0 }
 0x125   : > { %v499_v28 = vadd.f32 %v1649_v27, %v2039_v15  ;;  %v490_v29 = vpop.f32.mrb[5].mxu0 }
 0x126   : > { %v491_v31 = vadd.f32 %v2039_v15, %v490_v29  ;;  %v1650_v32 = vpop.f32.mrb[6].mxu0  ;;  %v579_v47 = vld [vmem:[#allocation5 + $0x10] sm:$0xff] }
 0x127   : > { %v562_v35 = vld [vmem:[#allocation5] sm:$0xff]  ;;  %544 = vst.msk [vmem:[#allocation5 + $0x30] sm:$0xff] %vm537_vm3, %v499_v28  ;;  %v502_v36 = vadd.f32 %v1650_v32, %v2039_v15  ;;  %v493_v37 = vpop.f32.mrb[7].mxu0 }
 0x128   : > { %v566_v38 = vadd.f32 %v564_v26, %v562_v35  ;;  %542 = vst.msk [vmem:[#allocation5 + $0x20] sm:$0xff] %vm537_vm3, %v491_v31  ;;  %v494_v39 = vadd.f32 %v2039_v15, %v493_v37  ;;  %v580_v54 = vld [vmem:[#allocation5 + $0x18] sm:$0xff] }
 0x129   : > { %v563_v41 = vld [vmem:[#allocation5 + $0x8] sm:$0xff]  ;;  %545 = vst.msk [vmem:[#allocation5 + $0x38] sm:$0xff] %vm537_vm3, %v502_v36 }
 0x12a   : > { %v568_v42 = vsub.f32 %v566_v38, %v1493_v34  ;;  %v567_v43 = vadd.f32 %v565_v30, %v563_v41  ;;  %543 = vst.msk [vmem:[#allocation5 + $0x28] sm:$0xff] %vm537_vm3, %v494_v39 }
 0x12c   : > { %vm570_vm6 = vcmp.gt.f32.partialorder %v568_v42, 1.0  ;;  %v581_v44 = vmul.f32 0.9, %v568_v42  ;;  %v569_v45 = vsub.f32 %v567_v43, %v1494_v40  ;;  %v1653_v46 = vpop.f32.mrb[8].mxu0 }
 0x12d   : > { %v515_v48 = vadd.f32 %v1653_v46, %v2039_v15  ;;  %v506_v49 = vpop.f32.mrb[9].mxu0  ;;  %v1495_v55 = vsel %vm570_vm6, 1.0, %v1853_v33 }
 0x12e   : > { %vm571_vm7 = vcmp.gt.f32.partialorder %v569_v45, 1.0  ;;  %v582_v50 = vmul.f32 0.9, %v569_v45  ;;  %v583_v51 = vadd.f32 %v581_v44, %v579_v47  ;;  %v507_v52 = vadd.f32 %v2039_v15, %v506_v49  ;;  %v1654_v53 = vpop.f32.mrb[10].mxu0  ;;  %v615_v21 = vld [vmem:[#allocation5 + $0x30] sm:$0xff] }
 0x12f   : > { %v1496_v56 = vsel %vm571_vm7, 1.0, %v1853_v33  ;;  %548 = vst.msk [vmem:[#allocation5 + $0x50] sm:$0xff] %vm537_vm3, %v515_v48  ;;  %v518_v57 = vadd.f32 %v1654_v53, %v2039_v15  ;;  %v509_v58 = vpop.f32.mrb[11].mxu0  ;;  %v597_v63 = vld [vmem:[#allocation5 + $0x20] sm:$0xff]  ;;  %vm874_vm7 = vcmask 130048  }
 0x130   : > { %v585_v59 = vsub.f32 %v583_v51, %v1495_v55  ;;  %v584_v60 = vadd.f32 %v582_v50, %v580_v54  ;;  %546 = vst.msk [vmem:[#allocation5 + $0x40] sm:$0xff] %vm537_vm3, %v507_v52  ;;  %v510_v61 = vadd.f32 %v2039_v15, %v509_v58  ;;  %v576_v62 = vpack.c.bf16 %v1496_v56, %v1495_v55  ;;  %v616_v25 = vld [vmem:[#allocation5 + $0x38] sm:$0xff] }
 0x131   : > { %549 = vst.msk [vmem:[#allocation5 + $0x58] sm:$0xff] %vm537_vm3, %v518_v57  ;;  %v598_v7 = vld [vmem:[#allocation5 + $0x28] sm:$0xff] }
 0x132   : > { %vm587_vm8 = vcmp.gt.f32.partialorder %v585_v59, 1.0  ;;  %v599_v0 = vmul.f32 0.9, %v585_v59  ;;  %v586_v1 = vsub.f32 %v584_v60, %v1496_v56  ;;  %547 = vst.msk [vmem:[#allocation5 + $0x48] sm:$0xff] %vm537_vm3, %v510_v61  ;;  %577 = vst.msk [vmem:[#allocation4] sm:$0xff] %vm537_vm3, %v576_v62 }
 0x133   : > { %v1497_v5 = vsel %vm587_vm8, 1.0, %v1853_v33 }
 0x134   : > { %v601_v2 = vadd.f32 %v599_v0, %v597_v63  ;;  %vm588_vm9 = vcmp.gt.f32.partialorder %v586_v1, 1.0  ;;  %v600_v3 = vmul.f32 0.9, %v586_v1  ;;  %v1657_v4 = vpop.f32.mrb[12].mxu0 }
 0x135   : > { %v1498_v6 = vsel %vm588_vm9, 1.0, %v1853_v33  ;;  %v531_v8 = vadd.f32 %v1657_v4, %v2039_v15  ;;  %v522_v9 = vpop.f32.mrb[13].mxu0 }
 0x136   : > { %v603_v10 = vsub.f32 %v601_v2, %v1497_v5  ;;  %v602_v11 = vadd.f32 %v600_v3, %v598_v7  ;;  %v523_v12 = vadd.f32 %v2039_v15, %v522_v9  ;;  %v1658_v13 = vpop.f32.mrb[14].mxu0  ;;  %v593_v14 = vpack.c.bf16 %v1498_v6, %v1497_v5  ;;  %v651_v45 = vld [vmem:[#allocation5 + $0x50] sm:$0xff] }
 0x137   : > { %552 = vst.msk [vmem:[#allocation5 + $0x70] sm:$0xff] %vm537_vm3, %v531_v8  ;;  %v534_v16 = vadd.f32 %v1658_v13, %v2039_v15  ;;  %v525_v17 = vpop.f32.mrb[15].mxu0  ;;  %v633_v30 = vld [vmem:[#allocation5 + $0x40] sm:$0xff] }
 0x138   : > { %vm605_vm10 = vcmp.gt.f32.partialorder %v603_v10, 1.0  ;;  %v617_v18 = vmul.f32 0.9, %v603_v10  ;;  %v604_v19 = vsub.f32 %v602_v11, %v1498_v6  ;;  %550 = vst.msk [vmem:[#allocation5 + $0x60] sm:$0xff] %vm537_vm3, %v523_v12  ;;  %v526_v20 = vadd.f32 %v2039_v15, %v525_v17  ;;  %595 = vst.msk [vmem:[#allocation4 + $0x8] sm:$0xff] %vm537_vm3, %v593_v14  ;;  %v652_v49 = vld [vmem:[#allocation5 + $0x58] sm:$0xff] }
 0x139   : > { %v706_v22 = vld [vmem:[#allocation4] sm:$0xff]  ;;  %553 = vst.msk [vmem:[#allocation5 + $0x78] sm:$0xff] %vm537_vm3, %v534_v16  ;;  %v1499_v26 = vsel %vm605_vm10, 1.0, %v1853_v33  ;;  %v634_v39 = vld [vmem:[#allocation5 + $0x48] sm:$0xff]  ;;  %vm923_vm10 = vcmask 125952  }
 0x13a   : > { %vm606_vm11 = vcmp.gt.f32.partialorder %v604_v19, 1.0  ;;  %v618_v23 = vmul.f32 0.9, %v604_v19  ;;  %v619_v24 = vadd.f32 %v617_v18, %v615_v21  ;;  %1667 = vmatprep.mubr.msk.bf16.mxu1 %vm537_vm3, %v706_v22  ;;  %551 = vst.msk [vmem:[#allocation5 + $0x68] sm:$0xff] %vm537_vm3, %v526_v20 }
 0x13b   : > { %v1500_v27 = vsel %vm606_vm11, 1.0, %v1853_v33 }
 0x13c   : > { %v621_v28 = vsub.f32 %v619_v24, %v1499_v26  ;;  %v620_v15 = vadd.f32 %v618_v23, %v616_v25  ;;  %v611_v29 = vpack.c.bf16 %v1500_v27, %v1499_v26  ;;  %v2112_v23 = vld [vmem:[%s2296_s4] ss:$0 sm:$0xff] }
 0x13e   : > { %vm623_vm12 = vcmp.gt.f32.partialorder %v621_v28, 1.0  ;;  %v635_v31 = vmul.f32 0.9, %v621_v28  ;;  %v622_v32 = vsub.f32 %v620_v15, %v1500_v27  ;;  %613 = vst.msk [vmem:[#allocation4 + $0x10] sm:$0xff] %vm537_vm3, %v611_v29  ;;  %v687_v5 = vld [vmem:[#allocation5 + $0x70] sm:$0xff] }
 0x13f   : > { %v707_v34 = vld [vmem:[#allocation4 + $0x8] sm:$0xff]  ;;  %v1501_v37 = vsel %vm623_vm12, 1.0, %v1853_v33  ;;  %v669_v55 = vld [vmem:[#allocation5 + $0x60] sm:$0xff] }
 0x140   : > { %v637_v35 = vadd.f32 %v635_v31, %v633_v30  ;;  %vm624_vm13 = vcmp.gt.f32.partialorder %v622_v32, 1.0  ;;  %v636_v36 = vmul.f32 0.9, %v622_v32  ;;  %1668 = vmatmul.mubr.msk.bf16.vlgmr.msra.gmra.mrb[0].mxu1 %vm537_vm3, %v707_v34  ;;  %v688_v9 = vld [vmem:[#allocation5 + $0x78] sm:$0xff]  ;;  %v891_v31 = vld [vmem:[#allocation3] sm:$0xff] }
 0x141   : > { %v1502_v38 = vsel %vm624_vm13, 1.0, %v1853_v33  ;;  %v670_v63 = vld [vmem:[#allocation5 + $0x68] sm:$0xff]  ;;  %v892_v32 = vld [vmem:[#allocation3 + $0x8] sm:$0xff]  ;;  %v901_v34 = vmul.f32 0.9, %v891_v31 }
 0x142   : > { %v639_v40 = vsub.f32 %v637_v35, %v1501_v37  ;;  %v638_v41 = vadd.f32 %v636_v36, %v634_v39  ;;  %v629_v42 = vpack.c.bf16 %v1502_v38, %v1501_v37  ;;  %vm894_vm8 = vcmp.gt.f32.partialorder %v892_v32, 1.0 }
 0x143   : > { %v902_v35 = vmul.f32 0.9, %v892_v32 }
 0x144   : > { %vm641_vm14 = vcmp.gt.f32.partialorder %v639_v40, 1.0  ;;  %v653_v43 = vmul.f32 0.9, %v639_v40  ;;  %v640_v44 = vsub.f32 %v638_v41, %v1502_v38  ;;  %631 = vst.msk [vmem:[#allocation4 + $0x18] sm:$0xff] %vm537_vm3, %v629_v42  ;;  %v1525_v40 = vsel %vm894_vm8, 1.0, %v1853_v33 }
 0x145   : > { %v708_v46 = vld [vmem:[#allocation4 + $0x10] sm:$0xff]  ;;  %v1503_v50 = vsel %vm641_vm14, 1.0, %v1853_v33 }
 0x146   : > { %vm642_vm15 = vcmp.gt.f32.partialorder %v640_v44, 1.0  ;;  %v654_v47 = vmul.f32 0.9, %v640_v44  ;;  %v655_v48 = vadd.f32 %v653_v43, %v651_v45  ;;  %1671 = vmatprep.mubr.msk.bf16.mxu1 %vm537_vm3, %v708_v46 }
 0x147   : > { %v1504_v51 = vsel %vm642_vm15, 1.0, %v1853_v33 }
 0x148   : > { %v657_v52 = vsub.f32 %v655_v48, %v1503_v50  ;;  %v656_v53 = vadd.f32 %v654_v47, %v652_v49  ;;  %v647_v54 = vpack.c.bf16 %v1504_v51, %v1503_v50 }
 0x14a   : > { %vm659_vm0 = vcmp.gt.f32.partialorder %v657_v52, 1.0  ;;  %v671_v56 = vmul.f32 0.9, %v657_v52  ;;  %v658_v57 = vsub.f32 %v656_v53, %v1504_v51  ;;  %649 = vst.msk [vmem:[#allocation4 + $0x20] sm:$0xff] %vm537_vm3, %v647_v54 }
 0x14b   : > { %v709_v58 = vld [vmem:[#allocation4 + $0x18] sm:$0xff]  ;;  %v1505_v61 = vsel %vm659_vm0, 1.0, %v1853_v33 }
 0x14c   : > { %v673_v59 = vadd.f32 %v671_v56, %v669_v55  ;;  %vm660_vm1 = vcmp.gt.f32.partialorder %v658_v57, 1.0  ;;  %v672_v60 = vmul.f32 0.9, %v658_v57  ;;  %1672 = vmatmul.mubr.msk.bf16.gmra.mrb[4].mxu1 %vm537_vm3, %v709_v58 }
 0x14d   : > { %v1506_v62 = vsel %vm660_vm1, 1.0, %v1853_v33 }
 0x14e   : > { %v675_v0 = vsub.f32 %v673_v59, %v1505_v61  ;;  %v674_v1 = vadd.f32 %v672_v60, %v670_v63  ;;  %v665_v2 = vpack.c.bf16 %v1506_v62, %v1505_v61 }
 0x150   : > { %v689_v3 = vmul.f32 0.9, %v675_v0  ;;  %v676_v4 = vsub.f32 %v674_v1, %v1506_v62  ;;  %667 = vst.msk [vmem:[#allocation4 + $0x28] sm:$0xff] %vm537_vm3, %v665_v2  ;;  %vm677_vm2 = vcmp.gt.f32.partialorder %v675_v0, 1.0 }
 0x151   : > { %v710_v6 = vld [vmem:[#allocation4 + $0x20] sm:$0xff]  ;;  %v1507_v10 = vsel %vm677_vm2, 1.0, %v1853_v33 }
 0x152   : > { %v690_v7 = vmul.f32 0.9, %v676_v4  ;;  %1675 = vmatprep.mubr.msk.bf16.mxu1 %vm537_vm3, %v710_v6  ;;  %vm678_vm4 = vcmp.gt.f32.partialorder %v676_v4, 1.0  ;;  %v691_v8 = vadd.f32 %v689_v3, %v687_v5 }
 0x153   : > { %v1508_v11 = vsel %vm678_vm4, 1.0, %v1853_v33 }
 0x154   : > { %v683_v12 = vpack.c.bf16 %v1508_v11, %v1507_v10  ;;  %v692_v13 = vadd.f32 %v690_v7, %v688_v9  ;;  %v693_v14 = vsub.f32 %v691_v8, %v1507_v10 }
 0x156   : > { %685 = vst.msk [vmem:[#allocation4 + $0x30] sm:$0xff] %vm537_vm3, %v683_v12  ;;  %v694_v16 = vsub.f32 %v692_v13, %v1508_v11  ;;  %704 = vst.msk [vmem:[#allocation2] sm:$0xff] %vm537_vm3, %v693_v14  ;;  %vm695_vm5 = vcmp.gt.f32.partialorder %v693_v14, 1.0 }
 0x157   : > { %v711_v17 = vld [vmem:[#allocation4 + $0x28] sm:$0xff]  ;;  %v1509_v18 = vsel %vm695_vm5, 1.0, %v1853_v33 }
 0x158   : > { %1676 = vmatmul.mubr.msk.bf16.gmra.mrb[8].mxu1 %vm537_vm3, %v711_v17  ;;  %705 = vst.msk [vmem:[#allocation2 + $0x8] sm:$0xff] %vm537_vm3, %v694_v16  ;;  %vm696_vm6 = vcmp.gt.f32.partialorder %v694_v16, 1.0 }
 0x159   : > { %v1510_v19 = vsel %vm696_vm6, 1.0, %v1853_v33 }
 0x15a   : > { %v701_v20 = vpack.c.bf16 %v1510_v19, %v1509_v18 }
 0x15c   : > { %703 = vst.msk [vmem:[#allocation4 + $0x38] sm:$0xff] %vm537_vm3, %v701_v20 }
 0x15d   : > { %v712_v21 = vld [vmem:[#allocation4 + $0x30] sm:$0xff] }
 0x15e   : > { %1679 = vmatprep.mubr.msk.bf16.mxu1 %vm537_vm3, %v712_v21 }
 0x163   : > { %v713_v22 = vld [vmem:[#allocation4 + $0x38] sm:$0xff] }
 0x164   : > { %1680 = vmatmul.mubr.msk.bf16.gmra.mrb[12].mxu1 %vm537_vm3, %v713_v22  ;;  %vm893_vm3 = vcmp.gt.f32.partialorder %v891_v31, 1.0 }
 0x165   : > { %v1524_v36 = vsel %vm893_vm3, 1.0, %v1853_v33 }
 0x213   : > { %v1669_v24 = vpop.f32.mrb[0].mxu1 }
 0x214   : > { %v820_v25 = vadd.f32 %v1669_v24, %v2112_v23  ;;  %v811_v26 = vpop.f32.mrb[1].mxu1 }
 0x215   : > { %v812_v27 = vadd.f32 %v2112_v23, %v811_v26  ;;  %v1670_v28 = vpop.f32.mrb[2].mxu1 }
 0x216   : > { %877 = vst.msk [vmem:[#allocation6 + $0x10] sm:$0xff] %vm874_vm7, %v820_v25  ;;  %v823_v15 = vadd.f32 %v1670_v28, %v2112_v23  ;;  %v814_v29 = vpop.f32.mrb[3].mxu1 }
 0x217   : > { %875 = vst.msk [vmem:[#allocation6] sm:$0xff] %vm874_vm7, %v812_v27  ;;  %v815_v30 = vadd.f32 %v2112_v23, %v814_v29 }
 0x218   : > { %878 = vst.msk [vmem:[#allocation6 + $0x18] sm:$0xff] %vm874_vm7, %v823_v15 }
 0x219   : > { %876 = vst.msk [vmem:[#allocation6 + $0x8] sm:$0xff] %vm874_vm7, %v815_v30 }
 0x21d   : > { %v927_v53 = vld [vmem:[#allocation6 + $0x10] sm:$0xff] }
 0x21e   : > { %v899_v37 = vld [vmem:[#allocation6] sm:$0xff] }
 0x21f   : > { %v903_v38 = vadd.f32 %v901_v34, %v899_v37  ;;  %v1673_v39 = vpop.f32.mrb[4].mxu1  ;;  %v928_v58 = vld [vmem:[#allocation6 + $0x18] sm:$0xff] }
 0x220   : > { %v900_v41 = vld [vmem:[#allocation6 + $0x8] sm:$0xff]  ;;  %v836_v42 = vadd.f32 %v1673_v39, %v2112_v23  ;;  %v827_v43 = vpop.f32.mrb[5].mxu1 }
 0x221   : > { %v905_v44 = vsub.f32 %v903_v38, %v1524_v36  ;;  %v904_v45 = vadd.f32 %v902_v35, %v900_v41  ;;  %v828_v46 = vadd.f32 %v2112_v23, %v827_v43  ;;  %v1674_v47 = vpop.f32.mrb[6].mxu1 }
 0x222   : > { %881 = vst.msk [vmem:[#allocation6 + $0x30] sm:$0xff] %vm874_vm7, %v836_v42  ;;  %v839_v48 = vadd.f32 %v1674_v47, %v2112_v23  ;;  %v830_v49 = vpop.f32.mrb[7].mxu1 }
 0x223   : > { %vm907_vm9 = vcmp.gt.f32.partialorder %v905_v44, 1.0  ;;  %913 = vst.msk [vmem:[%s1997_s9] sm:$0xff] %vm874_vm7, %v905_v44  ;;  %v929_v50 = vmul.f32 0.9, %v905_v44  ;;  %v906_v51 = vsub.f32 %v904_v45, %v1525_v40  ;;  %879 = vst.msk [vmem:[#allocation6 + $0x20] sm:$0xff] %vm874_vm7, %v828_v46  ;;  %v831_v52 = vadd.f32 %v2112_v23, %v830_v49 }
 0x224   : > { %v1526_v54 = vsel %vm907_vm9, 1.0, %v1853_v33  ;;  %882 = vst.msk [vmem:[#allocation6 + $0x38] sm:$0xff] %vm874_vm7, %v839_v48 }
 0x225   : > { %vm908_vm11 = vcmp.gt.f32.partialorder %v906_v51, 1.0  ;;  %914 = vst.msk [vmem:[%s1997_s9 + $0x8] sm:$0xff] %vm874_vm7, %v906_v51  ;;  %v930_v55 = vmul.f32 0.9, %v906_v51  ;;  %v1599_v56 = vpack.c.bf16 %v1526_v54, %v1526_v54  ;;  %v931_v57 = vadd.f32 %v929_v50, %v927_v53  ;;  %880 = vst.msk [vmem:[#allocation6 + $0x28] sm:$0xff] %vm874_vm7, %v831_v52 }
 0x226   : > { %v1527_v59 = vsel %vm908_vm11, 1.0, %v1853_v33 }
 0x227   : > { %924 = vst.msk [vmem:[%s1999_s16] sm:$0xf] %vm923_vm10, %v1599_v56  ;;  %v933_v60 = vsub.f32 %v931_v57, %v1526_v54  ;;  %v1600_v61 = vpack.c.bf16 %v1527_v59, %v1527_v59  ;;  %v932_v62 = vadd.f32 %v930_v55, %v928_v58 }
 0x229   : > { %vm935_vm12 = vcmp.gt.f32.partialorder %v933_v60, 1.0  ;;  %1532 = vst.msk [vmem:[%s1997_s9 + $0x10] sm:$0xff] %vm874_vm7, %v933_v60  ;;  %v958_v63 = vmul.f32 0.9, %v933_v60  ;;  %v934_v0 = vsub.f32 %v932_v62, %v1527_v59  ;;  %v985_v22 = vld [vmem:[#allocation6 + $0x30] sm:$0xff] }
 0x22a   : > { %925 = vst.msk [vmem:[%s1999_s16 + $0x4] sm:$0xf] %vm923_vm10, %v1600_v61  ;;  %v1530_v1 = vsel %vm935_vm12, 1.0, %v1853_v33  ;;  %v956_v2 = vld [vmem:[#allocation6 + $0x20] sm:$0xff] }
 0x22b   : > { %v1601_v3 = vpack.c.bf16 %v1530_v1, %v1530_v1  ;;  %v960_v4 = vadd.f32 %v958_v63, %v956_v2  ;;  %vm936_vm13 = vcmp.gt.f32.partialorder %v934_v0, 1.0  ;;  %1533 = vst.msk [vmem:[%s1997_s9 + $0x18] sm:$0xff] %vm874_vm7, %v934_v0  ;;  %v959_v5 = vmul.f32 0.9, %v934_v0  ;;  %v1677_v6 = vpop.f32.mrb[8].mxu1  ;;  %v986_v28 = vld [vmem:[#allocation6 + $0x38] sm:$0xff] }
 0x22c   : > { %v1531_v7 = vsel %vm936_vm13, 1.0, %v1853_v33  ;;  %v957_v8 = vld [vmem:[#allocation6 + $0x28] sm:$0xff]  ;;  %v852_v9 = vadd.f32 %v1677_v6, %v2112_v23  ;;  %v843_v10 = vpop.f32.mrb[9].mxu1 }
 0x22d   : > { %1536 = vst.msk [vmem:[%s1999_s16 + $0x8] sm:$0xf] %vm923_vm10, %v1601_v3  ;;  %v962_v11 = vsub.f32 %v960_v4, %v1530_v1  ;;  %v1602_v12 = vpack.c.bf16 %v1531_v7, %v1531_v7  ;;  %v961_v13 = vadd.f32 %v959_v5, %v957_v8  ;;  %v844_v14 = vadd.f32 %v2112_v23, %v843_v10  ;;  %v1678_v16 = vpop.f32.mrb[10].mxu1 }
 0x22e   : > { %885 = vst.msk [vmem:[#allocation6 + $0x50] sm:$0xff] %vm874_vm7, %v852_v9  ;;  %v855_v17 = vadd.f32 %v1678_v16, %v2112_v23  ;;  %v846_v18 = vpop.f32.mrb[11].mxu1 }
 0x22f   : > { %vm964_vm14 = vcmp.gt.f32.partialorder %v962_v11, 1.0  ;;  %1540 = vst.msk [vmem:[%s1997_s9 + $0x20] sm:$0xff] %vm874_vm7, %v962_v11  ;;  %v987_v19 = vmul.f32 0.9, %v962_v11  ;;  %v963_v20 = vsub.f32 %v961_v13, %v1531_v7  ;;  %883 = vst.msk [vmem:[#allocation6 + $0x40] sm:$0xff] %vm874_vm7, %v844_v14  ;;  %v847_v21 = vadd.f32 %v2112_v23, %v846_v18 }
 0x230   : > { %1537 = vst.msk [vmem:[%s1999_s16 + $0xc] sm:$0xf] %vm923_vm10, %v1602_v12  ;;  %v1538_v24 = vsel %vm964_vm14, 1.0, %v1853_v33 }
 0x231   : > { %886 = vst.msk [vmem:[#allocation6 + $0x58] sm:$0xff] %vm874_vm7, %v855_v17  ;;  %vm965_vm15 = vcmp.gt.f32.partialorder %v963_v20, 1.0  ;;  %1541 = vst.msk [vmem:[%s1997_s9 + $0x28] sm:$0xff] %vm874_vm7, %v963_v20  ;;  %v988_v25 = vmul.f32 0.9, %v963_v20  ;;  %v1603_v26 = vpack.c.bf16 %v1538_v24, %v1538_v24  ;;  %v989_v27 = vadd.f32 %v987_v19, %v985_v22 }
 0x232   : > { %884 = vst.msk [vmem:[#allocation6 + $0x48] sm:$0xff] %vm874_vm7, %v847_v21  ;;  %v1539_v15 = vsel %vm965_vm15, 1.0, %v1853_v33 }
 0x233   : > { %1544 = vst.msk [vmem:[%s1999_s16 + $0x10] sm:$0xf] %vm923_vm10, %v1603_v26  ;;  %v991_v29 = vsub.f32 %v989_v27, %v1538_v24  ;;  %v1604_v30 = vpack.c.bf16 %v1539_v15, %v1539_v15  ;;  %v990_v31 = vadd.f32 %v988_v25, %v986_v28 }
 0x235   : > { %vm993_vm0 = vcmp.gt.f32.partialorder %v991_v29, 1.0  ;;  %1548 = vst.msk [vmem:[%s1997_s9 + $0x30] sm:$0xff] %vm874_vm7, %v991_v29  ;;  %v1016_v32 = vmul.f32 0.9, %v991_v29  ;;  %v992_v34 = vsub.f32 %v990_v31, %v1539_v15  ;;  %v1043_v55 = vld [vmem:[#allocation6 + $0x50] sm:$0xff] }
 0x236   : > { %1545 = vst.msk [vmem:[%s1999_s16 + $0x14] sm:$0xf] %vm923_vm10, %v1604_v30  ;;  %v1546_v35 = vsel %vm993_vm0, 1.0, %v1853_v33  ;;  %v1014_v36 = vld [vmem:[#allocation6 + $0x40] sm:$0xff]  ;;  %v1207_v30 = vld [vmem:[%s1997_s9 + $0x8] sm:$0xff] (%p1958_p9)  ;;  %v1209_v31 = vld [vmem:[%s1997_s9 + $0x10] sm:$0xff] (%p1958_p9) }
 0x237   : > { %v1605_v37 = vpack.c.bf16 %v1546_v35, %v1546_v35  ;;  %v1018_v38 = vadd.f32 %v1016_v32, %v1014_v36  ;;  %vm994_vm1 = vcmp.gt.f32.partialorder %v992_v34, 1.0  ;;  %1549 = vst.msk [vmem:[%s1997_s9 + $0x38] sm:$0xff] %vm874_vm7, %v992_v34  ;;  %v1017_v39 = vmul.f32 0.9, %v992_v34  ;;  %v1681_v40 = vpop.f32.mrb[12].mxu1  ;;  %v1211_v32 = vld [vmem:[%s1997_s9 + $0x18] sm:$0xff] (%p1958_p9) }
 0x238   : > { %v1547_v41 = vsel %vm994_vm1, 1.0, %v1853_v33  ;;  %v868_v43 = vadd.f32 %v1681_v40, %v2112_v23  ;;  %v859_v44 = vpop.f32.mrb[13].mxu1  ;;  %v1044_v60 = vld [vmem:[#allocation6 + $0x58] sm:$0xff]  ;;  %v1213_v34 = vld [vmem:[%s1997_s9 + $0x20] sm:$0xff] (%p1958_p9)  ;;  %1208 = vst [vmem:[%s1147_s30 + $0x8] sm:$0xff] (%p1958_p9), %v1207_v30  ;;  %1210 = vst [vmem:[%s1147_s30 + $0x20] sm:$0xff] (%p1958_p9), %v1209_v31 }
 0x239   : > { %v1015_v42 = vld [vmem:[#allocation6 + $0x48] sm:$0xff]  ;;  %1552 = vst.msk [vmem:[%s1999_s16 + $0x18] sm:$0xf] %vm923_vm10, %v1605_v37  ;;  %v1020_v45 = vsub.f32 %v1018_v38, %v1546_v35  ;;  %v1606_v46 = vpack.c.bf16 %v1547_v41, %v1547_v41  ;;  %v860_v48 = vadd.f32 %v2112_v23, %v859_v44  ;;  %v1682_v49 = vpop.f32.mrb[14].mxu1  ;;  %1212 = vst [vmem:[%s1147_s30 + $0x28] sm:$0xff] (%p1958_p9), %v1211_v32 }
 0x23a   : > { %v1019_v47 = vadd.f32 %v1017_v39, %v1015_v42  ;;  %889 = vst.msk [vmem:[#allocation6 + $0x70] sm:$0xff] %vm874_vm7, %v868_v43  ;;  %v871_v50 = vadd.f32 %v1682_v49, %v2112_v23  ;;  %v862_v51 = vpop.f32.mrb[15].mxu1  ;;  %v1215_v35 = vld [vmem:[%s1997_s9 + $0x28] sm:$0xff] (%p1958_p9)  ;;  %1214 = vst [vmem:[%s1147_s30 + $0x40] sm:$0xff] (%p1958_p9), %v1213_v34 }
 0x23b   : > { %vm1022_vm2 = vcmp.gt.f32.partialorder %v1020_v45, 1.0  ;;  %1556 = vst.msk [vmem:[%s1997_s9 + $0x40] sm:$0xff] %vm874_vm7, %v1020_v45  ;;  %v1045_v52 = vmul.f32 0.9, %v1020_v45  ;;  %887 = vst.msk [vmem:[#allocation6 + $0x60] sm:$0xff] %vm874_vm7, %v860_v48  ;;  %v863_v54 = vadd.f32 %v2112_v23, %v862_v51 }
 0x23c   : > { %1553 = vst.msk [vmem:[%s1999_s16 + $0x1c] sm:$0xf] %vm923_vm10, %v1606_v46  ;;  %v1021_v53 = vsub.f32 %v1019_v47, %v1547_v41  ;;  %v1554_v56 = vsel %vm1022_vm2, 1.0, %v1853_v33  ;;  %v1217_v36 = vld [vmem:[%s1997_s9 + $0x30] sm:$0xff] (%p1958_p9)  ;;  %1216 = vst [vmem:[%s1147_s30 + $0x48] sm:$0xff] (%p1958_p9), %v1215_v35 }
 0x23d   : > { %890 = vst.msk [vmem:[#allocation6 + $0x78] sm:$0xff] %vm874_vm7, %v871_v50  ;;  %v1607_v58 = vpack.c.bf16 %v1554_v56, %v1554_v56  ;;  %v1047_v59 = vadd.f32 %v1045_v52, %v1043_v55  ;;  %888 = vst.msk [vmem:[#allocation6 + $0x68] sm:$0xff] %vm874_vm7, %v863_v54 }
 0x23e   : > { %vm1023_vm4 = vcmp.gt.f32.partialorder %v1021_v53, 1.0  ;;  %1557 = vst.msk [vmem:[%s1997_s9 + $0x48] sm:$0xff] %vm874_vm7, %v1021_v53  ;;  %v1046_v57 = vmul.f32 0.9, %v1021_v53  ;;  %v1219_v37 = vld [vmem:[%s1997_s9 + $0x38] sm:$0xff] (%p1958_p9)  ;;  %1218 = vst [vmem:[%s1147_s30 + $0x60] sm:$0xff] (%p1958_p9), %v1217_v36 }
 0x23f   : > { %v1555_v61 = vsel %vm1023_vm4, 1.0, %v1853_v33  ;;  %1560 = vst.msk [vmem:[%s1999_s16 + $0x20] sm:$0xf] %vm923_vm10, %v1607_v58  ;;  %v1049_v23 = vsub.f32 %v1047_v59, %v1554_v56  ;;  %1220 = vst [vmem:[%s1147_s30 + $0x68] sm:$0xff] (%p1958_p9), %v1219_v37 }
 0x240   : > { %v1608_v62 = vpack.c.bf16 %v1555_v61, %v1555_v61  ;;  %v1048_v63 = vadd.f32 %v1046_v57, %v1044_v60 }
 0x241   : > { %vm1051_vm5 = vcmp.gt.f32.partialorder %v1049_v23, 1.0  ;;  %1564 = vst.msk [vmem:[%s1997_s9 + $0x50] sm:$0xff] %vm874_vm7, %v1049_v23  ;;  %v1074_v0 = vmul.f32 0.9, %v1049_v23  ;;  %v1101_v14 = vld [vmem:[#allocation6 + $0x70] sm:$0xff] }
 0x242   : > { %1561 = vst.msk [vmem:[%s1999_s16 + $0x24] sm:$0xf] %vm923_vm10, %v1608_v62  ;;  %v1050_v1 = vsub.f32 %v1048_v63, %v1555_v61  ;;  %v1562_v2 = vsel %vm1051_vm5, 1.0, %v1853_v33  ;;  %v1072_v3 = vld [vmem:[#allocation6 + $0x60] sm:$0xff] }
 0x243   : > { %v1609_v4 = vpack.c.bf16 %v1562_v2, %v1562_v2  ;;  %v1076_v5 = vadd.f32 %v1074_v0, %v1072_v3  ;;  %v1221_v38 = vld [vmem:[%s1997_s9 + $0x40] sm:$0xff] (%p1958_p9) }
 0x244   : > { %vm1052_vm6 = vcmp.gt.f32.partialorder %v1050_v1, 1.0  ;;  %1565 = vst.msk [vmem:[%s1997_s9 + $0x58] sm:$0xff] %vm874_vm7, %v1050_v1  ;;  %v1075_v6 = vmul.f32 0.9, %v1050_v1  ;;  %v1073_v8 = vld [vmem:[#allocation6 + $0x68] sm:$0xff]  ;;  %v1102_v20 = vld [vmem:[#allocation6 + $0x78] sm:$0xff] }
 0x245   : > { %v1563_v7 = vsel %vm1052_vm6, 1.0, %v1853_v33  ;;  %1568 = vst.msk [vmem:[%s1999_s16 + $0x28] sm:$0xf] %vm923_vm10, %v1609_v4  ;;  %v1078_v9 = vsub.f32 %v1076_v5, %v1562_v2  ;;  %v1223_v39 = vld [vmem:[%s1997_s9 + $0x48] sm:$0xff] (%p1958_p9)  ;;  %1222 = vst [vmem:[%s1147_s30 + $0x80] sm:$0xff] (%p1958_p9), %v1221_v38 }
 0x246   : > { %v1610_v10 = vpack.c.bf16 %v1563_v7, %v1563_v7  ;;  %v1077_v11 = vadd.f32 %v1075_v6, %v1073_v8  ;;  %1224 = vst [vmem:[%s1147_s30 + $0x88] sm:$0xff] (%p1958_p9), %v1223_v39 }
 0x247   : > { %vm1080_vm3 = vcmp.gt.f32.partialorder %v1078_v9, 1.0  ;;  %1572 = vst.msk [vmem:[%s1997_s9 + $0x60] sm:$0xff] %vm874_vm7, %v1078_v9  ;;  %v1103_v12 = vmul.f32 0.9, %v1078_v9 }
 0x248   : > { %1569 = vst.msk [vmem:[%s1999_s16 + $0x2c] sm:$0xf] %vm923_vm10, %v1610_v10  ;;  %v1079_v13 = vsub.f32 %v1077_v11, %v1563_v7  ;;  %v1570_v16 = vsel %vm1080_vm3, 1.0, %v1853_v33  ;;  %v1225_v40 = vld [vmem:[%s1997_s9 + $0x50] sm:$0xff] (%p1958_p9) }
 0x249   : > { %v1611_v17 = vpack.c.bf16 %v1570_v16, %v1570_v16  ;;  %v1105_v18 = vadd.f32 %v1103_v12, %v1101_v14  ;;  %1226 = vst [vmem:[%s1147_s30 + $0xa0] sm:$0xff] (%p1958_p9), %v1225_v40 }
 0x24a   : > { %vm1081_vm8 = vcmp.gt.f32.partialorder %v1079_v13, 1.0  ;;  %1573 = vst.msk [vmem:[%s1997_s9 + $0x68] sm:$0xff] %vm874_vm7, %v1079_v13  ;;  %v1104_v19 = vmul.f32 0.9, %v1079_v13 }
 0x24b   : > { %v1571_v21 = vsel %vm1081_vm8, 1.0, %v1853_v33  ;;  %1576 = vst.msk [vmem:[%s1999_s16 + $0x30] sm:$0xf] %vm923_vm10, %v1611_v17  ;;  %v1107_v22 = vsub.f32 %v1105_v18, %v1570_v16  ;;  %v1227_v41 = vld [vmem:[%s1997_s9 + $0x58] sm:$0xff] (%p1958_p9) }
 0x24c   : > { %v1612_v24 = vpack.c.bf16 %v1571_v21, %v1571_v21  ;;  %v1106_v25 = vadd.f32 %v1104_v19, %v1102_v20  ;;  %1228 = vst [vmem:[%s1147_s30 + $0xa8] sm:$0xff] (%p1958_p9), %v1227_v41 }
 0x24d   : > { %vm1109_vm9 = vcmp.gt.f32.partialorder %v1107_v22, 1.0  ;;  %1578 = vst.msk [vmem:[%s1997_s9 + $0x70] sm:$0xff] %vm874_vm7, %v1107_v22  ;;  %1129 = vst.msk [vmem:[#allocation3] sm:$0xff] %vm874_vm7, %v1107_v22 }
 0x24e   : > { %1577 = vst.msk [vmem:[%s1999_s16 + $0x34] sm:$0xf] %vm923_vm10, %v1612_v24  ;;  %v1108_v26 = vsub.f32 %v1106_v25, %v1571_v21  ;;  %v1580_v27 = vsel %vm1109_vm9, 1.0, %v1853_v33  ;;  %1141 = sbr.rel (!%p1958_p9) target bundleno = 601 (0x259), region = 52  ;;  %v1229_v42 = vld [vmem:[%s1997_s9 + $0x60] sm:$0xff] (%p1958_p9) }
 0x24f   : > { %v1613_v28 = vpack.c.bf16 %v1580_v27, %v1580_v27  ;;  %1230 = vst [vmem:[%s1147_s30 + $0xc0] sm:$0xff] (%p1958_p9), %v1229_v42 }
 0x250   : > { %vm1110_vm11 = vcmp.gt.f32.partialorder %v1108_v26, 1.0  ;;  %1579 = vst.msk [vmem:[%s1997_s9 + $0x78] sm:$0xff] %vm874_vm7, %v1108_v26  ;;  %1130 = vst.msk [vmem:[#allocation3 + $0x8] sm:$0xff] %vm874_vm7, %v1108_v26 }
 0x251   : > { %v1581_v15 = vsel %vm1110_vm11, 1.0, %v1853_v33  ;;  %1584 = vst.msk [vmem:[%s1999_s16 + $0x38] sm:$0xf] %vm923_vm10, %v1613_v28  ;;  %v1205_v33 = vld [vmem:[%s1997_s9] sm:$0xff] (%p1958_p9)  ;;  %v1231_v43 = vld [vmem:[%s1997_s9 + $0x68] sm:$0xff] (%p1958_p9) }
 0x252   : > { %v1614_v29 = vpack.c.bf16 %v1581_v15, %v1581_v15  ;;  %1206 = vst [vmem:[%s1147_s30] sm:$0xff] (%p1958_p9), %v1205_v33  ;;  %1232 = vst [vmem:[%s1147_s30 + $0xc8] sm:$0xff] (%p1958_p9), %v1231_v43 }
 0x254   : > { %1585 = vst.msk [vmem:[%s1999_s16 + $0x3c] sm:$0xf] %vm923_vm10, %v1614_v29  ;;  %v1233_v44 = vld [vmem:[%s1997_s9 + $0x70] sm:$0xff] (%p1958_p9) }
 0x255   : > { %1234 = vst [vmem:[%s1147_s30 + $0xe0] sm:$0xff] %v1233_v44 }
 0x257   : > { %v1235_v45 = vld [vmem:[%s1997_s9 + $0x78] sm:$0xff] }
 0x258   : > { %1236 = vst [vmem:[%s1147_s30 + $0xe8] sm:$0xff] %v1235_v45 }
 0x259 PF: > { %1242 = sbr.rel (!%p1958_p9) target bundleno = 610 (0x262), region = 90  ;;  %s1593_s29 = sshll.u32 (%p1958_p9), %s1832_s25, 1  ;;  %v1264_v46 = vld [vmem:[%s1999_s16] sm:$0xff] (%p1958_p9)   ;;  %v1268_v47 = vld [vmem:[%s1999_s16 + $0x8] sm:$0xff] (%p1958_p9)   ;;  %v1272_v48 = vld [vmem:[%s1999_s16 + $0x10] sm:$0xff] (%p1958_p9)  }
 0x25a   : > { %s1616_s8 = sshll.u32 (%p1958_p9), %s1828_s24, 5  ;;  %v1276_v49 = vld [vmem:[%s1999_s16 + $0x18] sm:$0xff] (%p1958_p9)   ;;  %v1280_v50 = vld [vmem:[%s1999_s16 + $0x20] sm:$0xff] (%p1958_p9)   ;;  %v1284_v51 = vld [vmem:[%s1999_s16 + $0x28] sm:$0xff] (%p1958_p9)  }
 0x25b   : > { %s1246_s9 = sadd.s32 (%p1958_p9), %s1616_s8, %s1593_s29  ;;  %v1288_v52 = vld [vmem:[%s1999_s16 + $0x30] sm:$0xff] (%p1958_p9)  }
 0x25c   : > { %s1595_s14 = sshll.u32 (%p1958_p9), %s1246_s9, 2 }
 0x25d   : > { %s1248_s27 = scalar_lea.vmem (%p1958_p9), %s2298_s6, %s1595_s14 }
 0x25e   : > { %1265 = vst [vmem:[%s1248_s27] sm:$0xff] (%p1958_p9), %v1264_v46   ;;  %1269 = vst [vmem:[%s1248_s27 + $0x10] sm:$0xff] (%p1958_p9), %v1268_v47  }
 0x25f   : > { %v1292_v53 = vld [vmem:[%s1999_s16 + $0x38] sm:$0xff] (%p1958_p9)   ;;  %1273 = vst [vmem:[%s1248_s27 + $0x20] sm:$0xff] (%p1958_p9), %v1272_v48   ;;  %1277 = vst [vmem:[%s1248_s27 + $0x30] sm:$0xff] (%p1958_p9), %v1276_v49  }
 0x260   : > { %1281 = vst [vmem:[%s1248_s27 + $0x40] sm:$0xff] %v1280_v50   ;;  %1285 = vst [vmem:[%s1248_s27 + $0x50] sm:$0xff] %v1284_v51  }
 0x261   : > { %1289 = vst [vmem:[%s1248_s27 + $0x60] sm:$0xff] %v1288_v52   ;;  %1293 = vst [vmem:[%s1248_s27 + $0x70] sm:$0xff] %v1292_v53  }
 0x262 PF: > { %s20_s28 = sadd.s32 1, %s1844_s28   ;;  %s2308_s25 = sld [smem:[#allocation15_spill]] }
 0x263   : > { %p17_p2 = scmp.ge.s32.totalorder %s20_s28, 6   ;;  %s2309_s16 = sld [smem:[#allocation16_spill]] }
 0x264   : > { %s2310_s27 = sld [smem:[#allocation17_spill]]  ;;  %s2311_s21 = smov %s1820_s22 }
 0x265   : > { %s2312_s22 = smov %s1824_s23  ;;  %s2313_s23 = smov %s1963_s15 }
 0x266   : > { %s2314_s24 = smov %s1836_s26  ;;  %19 = sbr.rel (!%p17_p2) target bundleno = 5 (0x5), region = 215 }
 0x269   : > { %s2315_s26 = smov %s2309_s16 }
 0x26d   :  { %1367 = vsyncpa [#allocation8], 1 }
 0x26e   :  { %1369 = vsyncpa [#allocation8 + $0x1], 1 }

</bundles_post_ra>
